<compile_context>
chip_gen: v5e
topology: v5e:2x2
jax: 0.10.0
libtpu: 0.0.40
codegen_flags: <defaults>
</compile_context>

<pallas_src>
import functools

import jax
import jax.numpy as jnp
from jax.experimental import pallas as pl
from jax.experimental.pallas import tpu as pltpu

IN_FEATURES = 128 * 7 * 7   # 6272
HIDDEN = 128
NUM_CLASSES = 10


def _round_up(n, m):
    return ((n + m - 1) // m) * m


def postconv_kernel(x_ref, w1_ref, b1_ref, w2_ref, b2_ref, o_ref):
    # Cast x to bf16 in-kernel (no separate wrapper cast / extra HBM pass).
    x_bf = x_ref[...].astype(jnp.bfloat16)
    # fc1: (TB, 6272) @ (6272, 128) -> f32 accumulation on the MXU.
    h = jnp.dot(x_bf, w1_ref[...], preferred_element_type=jnp.float32)
    h = jnp.maximum(h + b1_ref[...], 0.0)
    # out: (TB, 128) @ (128, out_pad) into a lane-dense (128-wide) output slab.
    o = jnp.dot(h.astype(w2_ref.dtype), w2_ref[...],
                preferred_element_type=jnp.float32)
    o_ref[...] = (o + b2_ref[...]).astype(o_ref.dtype)


def prepare_postconv_params(w1, b1, w2, b2):
    """One-time (init-time) prep: bf16 weight casts + lane-dense classifier pad.

    w1: (6272, 128); b1: (1, 128); w2: (128, C); b2: (1, C)  (stored transposed
    relative to nn.Linear, i.e. (in_features, out_features)).
    """
    in_features, hidden = w1.shape
    hidden2, num_classes = w2.shape
    assert hidden == hidden2
    out_pad = _round_up(max(num_classes, 128), 128)
    w1_bf = w1.astype(jnp.bfloat16)
    b1_f = jnp.asarray(b1, jnp.float32).reshape(1, hidden)
    w2p = (jnp.zeros((hidden, out_pad), jnp.bfloat16)
           .at[:, :num_classes].set(w2.astype(jnp.bfloat16)))
    b2p = (jnp.zeros((1, out_pad), jnp.float32)
           .at[:, :num_classes].set(jnp.asarray(b2, jnp.float32)
                                    .reshape(1, num_classes)))
    return dict(w1=w1_bf, b1=b1_f, w2=w2p, b2=b2p, num_classes=num_classes)


def postconv_forward(x, params, *, block_b=512):
    """x: (B, 6272) f32 or bf16; params from prepare_postconv_params()."""
    assert block_b % 16 == 0, "batch tile must be a multiple of 16 (bf16 sublanes)"
    w1, b1, w2, b2 = params["w1"], params["b1"], params["w2"], params["b2"]
    num_classes = params["num_classes"]
    B, in_features = x.shape
    hidden = w1.shape[1]
    out_pad = w2.shape[1]
    assert in_features == w1.shape[0]

    # Batch tile: multiple of 16; keep >= 2 grid steps whenever B > 16 so the
    # "parallel" batch axis keeps both v7x TensorCores busy.
    half_b = _round_up(max((B + 1) // 2, 16), 16)
    tb = min(block_b, half_b)
    padded_b = _round_up(B, tb)
    if padded_b != B:
        # Only for ragged batches; one extra pass over just the pad rows.
        x = jnp.pad(x, ((0, padded_b - B), (0, 0)))
    grid_b = padded_b // tb

    flops = 2 * padded_b * (in_features * hidden + hidden * out_pad)
    bytes_accessed = (padded_b * in_features * x.dtype.itemsize
                      + w1.size * w1.dtype.itemsize + b1.size * 4
                      + w2.size * w2.dtype.itemsize + b2.size * 4
                      + padded_b * out_pad * 4)

    # Resident operands: constant index_map + single buffer (DMA'd once).
    resident = functools.partial(pl.BlockSpec, pipeline_mode=pl.Buffered(1))

    out = pl.pallas_call(
        postconv_kernel,
        out_shape=jax.ShapeDtypeStruct((padded_b, out_pad), jnp.float32),
        grid_spec=pltpu.PrefetchScalarGridSpec(
            num_scalar_prefetch=0,
            grid=(grid_b,),
            in_specs=[
                # x: one batch tile per grid step (double-buffered by Pallas).
                pl.BlockSpec((tb, in_features), lambda i: (i, 0)),
                # weights / biases: same block every step.
                resident((in_features, hidden), lambda i: (0, 0)),
                resident((1, hidden), lambda i: (0, 0)),
                resident((hidden, out_pad), lambda i: (0, 0)),
                resident((1, out_pad), lambda i: (0, 0)),
            ],
            out_specs=pl.BlockSpec((tb, out_pad), lambda i: (i, 0)),
        ),
        compiler_params=pltpu.CompilerParams(
            dimension_semantics=("parallel",),   # shard batch across v7x's 2 TCs
            vmem_limit_bytes=48 << 20,           # ~35 MiB actual use at TB=512 f32 x
        ),
        cost_estimate=pl.CostEstimate(
            flops=flops, transcendentals=0, bytes_accessed=bytes_accessed),
    )(x, w1, b1, w2, b2)

    # Drop batch padding and the lane-padding of the classifier head.
    return out[:B, :num_classes]


def init_params(key, num_classes=NUM_CLASSES):
    """Deterministic synthetic init matching nn.Linear shapes (stored transposed)."""
    k1, k2, k3, k4 = jax.random.split(key, 4)
    bound1 = 1.0 / (IN_FEATURES ** 0.5)
    w1 = jax.random.uniform(k1, (IN_FEATURES, HIDDEN), jnp.float32, -bound1, bound1)
    b1 = jax.random.uniform(k2, (1, HIDDEN), jnp.float32, -bound1, bound1)
    bound2 = 1.0 / (HIDDEN ** 0.5)
    w2 = jax.random.uniform(k3, (HIDDEN, num_classes), jnp.float32, -bound2, bound2)
    b2 = jax.random.uniform(k4, (1, num_classes), jnp.float32, -bound2, bound2)
    return w1, b1, w2, b2


if __name__ == "__main__":
    key = jax.random.PRNGKey(0)
    kx, kp, kx2 = jax.random.split(key, 3)

    w1, b1, w2, b2 = init_params(kp, NUM_CLASSES)
    # Hoisted one-time param prep (bf16 casts, lane-dense classifier pad).
    params = prepare_postconv_params(w1, b1, w2, b2)

    def ref_quantized(x):
        # Exact-math reference on bf16-rounded operands (matches the kernel's
        # bf16-operand / f32-accumulate MXU path).
        xq = x.astype(jnp.bfloat16).astype(jnp.float32)
        w1q = w1.astype(jnp.bfloat16).astype(jnp.float32)
        w2q = w2.astype(jnp.bfloat16).astype(jnp.float32)
        h = jnp.maximum(
            jnp.dot(xq, w1q, precision=jax.lax.Precision.HIGHEST) + b1, 0.0)
        hq = h.astype(jnp.bfloat16).astype(jnp.float32)
        return jnp.dot(hq, w2q, precision=jax.lax.Precision.HIGHEST) + b2

    def ref_f32(x):
        h = jnp.maximum(
            jnp.dot(x, w1, precision=jax.lax.Precision.HIGHEST) + b1, 0.0)
        return jnp.dot(h, w2, precision=jax.lax.Precision.HIGHEST) + b2

    # Small batch: single grid step (batch padded 2 -> 16).
    x_small = jax.random.normal(kx, (2, IN_FEATURES), jnp.float32)
    out_small = jax.block_until_ready(postconv_forward(x_small, params))
    assert out_small.shape == (2, NUM_CLASSES)
    assert jnp.allclose(out_small, ref_quantized(x_small), atol=1e-2, rtol=1e-2)
    assert jnp.allclose(out_small, ref_f32(x_small), atol=5e-2, rtol=5e-2)

    # Larger batch exercising the multi-step batch grid (300 -> 2 tiles of 160).
    x_big = jax.random.normal(kx2, (300, IN_FEATURES), jnp.float32)
    out_big = jax.block_until_ready(postconv_forward(x_big, params))
    assert out_big.shape == (300, NUM_CLASSES)
    assert jnp.allclose(out_big, ref_quantized(x_big), atol=1e-2, rtol=1e-2)
    assert jnp.allclose(out_big, ref_f32(x_big), atol=5e-2, rtol=5e-2)

    print("KERNEL_OK")
</pallas_src>

<mosaic_0001>
module attributes {stable_mosaic.version = 11 : i64} {
  func.func @postconv_kernel(%arg0: i32, %arg1: memref<16x6272xf32, #tpu.memory_space<vmem>>, %arg2: memref<6272x128xbf16, #tpu.memory_space<vmem>>, %arg3: memref<1x128xf32, #tpu.memory_space<vmem>>, %arg4: memref<128x128xbf16, #tpu.memory_space<vmem>>, %arg5: memref<1x128xf32, #tpu.memory_space<vmem>>, %arg6: memref<16x128xf32, #tpu.memory_space<vmem>>) attributes {dimension_semantics = [#tpu.dimension_semantics<parallel>], iteration_bounds = array<i64: 1>, scalar_prefetch = 0 : i64, scratch_operands = 0 : i64, tpu.core_type = #tpu.core_type<tc>, window_params = [{transform_indices = @transform_0, window_bounds = array<i64: 16, 6272>}, {pipeline_mode = #tpu.pipeline_mode<synchronous>, transform_indices = @transform_1, window_bounds = array<i64: 6272, 128>}, {pipeline_mode = #tpu.pipeline_mode<synchronous>, transform_indices = @transform_2, window_bounds = array<i64: 1, 128>}, {pipeline_mode = #tpu.pipeline_mode<synchronous>, transform_indices = @transform_3, window_bounds = array<i64: 128, 128>}, {pipeline_mode = #tpu.pipeline_mode<synchronous>, transform_indices = @transform_4, window_bounds = array<i64: 1, 128>}, {transform_indices = @transform_5, window_bounds = array<i64: 16, 128>}]} {
    %c0 = arith.constant 0 : index
    %c0_0 = arith.constant 0 : index
    %0 = vector.load %arg1[%c0, %c0_0] : memref<16x6272xf32, #tpu.memory_space<vmem>>, vector<16x6272xf32>
    %1 = arith.truncf %0 : vector<16x6272xf32> to vector<16x6272xbf16>
    %c0_1 = arith.constant 0 : index
    %c0_2 = arith.constant 0 : index
    %2 = vector.load %arg2[%c0_1, %c0_2] : memref<6272x128xbf16, #tpu.memory_space<vmem>>, vector<6272x128xbf16>
    %cst = arith.constant dense<0.000000e+00> : vector<16x128xf32>
    %3 = tpu.matmul %1, %2, %cst {dimension_numbers = #tpu.dot_dimension_numbers<[1], [0], [0], [1], [0, 0, 1, 1], [], []>} : vector<16x6272xbf16>, vector<6272x128xbf16>, vector<16x128xf32> -> vector<16x128xf32>
    %c0_3 = arith.constant 0 : index
    %c0_4 = arith.constant 0 : index
    %4 = vector.load %arg3[%c0_3, %c0_4] : memref<1x128xf32, #tpu.memory_space<vmem>>, vector<1x128xf32>
    %5 = vector.broadcast %4 : vector<1x128xf32> to vector<16x128xf32>
    %6 = arith.addf %3, %5 : vector<16x128xf32>
    %cst_5 = arith.constant 0.000000e+00 : f32
    %7 = vector.broadcast %cst_5 : f32 to vector<16x128xf32>
    %8 = arith.maximumf %6, %7 : vector<16x128xf32>
    %9 = arith.truncf %8 : vector<16x128xf32> to vector<16x128xbf16>
    %c0_6 = arith.constant 0 : index
    %c0_7 = arith.constant 0 : index
    %10 = vector.load %arg4[%c0_6, %c0_7] : memref<128x128xbf16, #tpu.memory_space<vmem>>, vector<128x128xbf16>
    %cst_8 = arith.constant dense<0.000000e+00> : vector<16x128xf32>
    %11 = tpu.matmul %9, %10, %cst_8 {dimension_numbers = #tpu.dot_dimension_numbers<[1], [0], [0], [1], [0, 0, 1, 1], [], []>} : vector<16x128xbf16>, vector<128x128xbf16>, vector<16x128xf32> -> vector<16x128xf32>
    %c0_9 = arith.constant 0 : index
    %c0_10 = arith.constant 0 : index
    %12 = vector.load %arg5[%c0_9, %c0_10] : memref<1x128xf32, #tpu.memory_space<vmem>>, vector<1x128xf32>
    %13 = vector.broadcast %12 : vector<1x128xf32> to vector<16x128xf32>
    %14 = arith.addf %11, %13 : vector<16x128xf32>
    %c0_11 = arith.constant 0 : index
    %c0_12 = arith.constant 0 : index
    %15 = vector.load %arg6[%c0_11, %c0_12] : memref<16x128xf32, #tpu.memory_space<vmem>>, vector<16x128xf32>
    tpu.vector_store %arg6[%c0_11, %c0_12], %14 {strides = array<i32>} : memref<16x128xf32, #tpu.memory_space<vmem>>, vector<16x128xf32>,
    return
  }
  func.func @transform_0(%arg0: i32) -> (i32, i32) {
    %c0_i32 = arith.constant 0 : i32
    %c0_i32_0 = arith.constant 0 : i32
    return %arg0, %c0_i32 : i32, i32
  }
  func.func @transform_1(%arg0: i32) -> (i32, i32) {
    %c0_i32 = arith.constant 0 : i32
    %c0_i32_0 = arith.constant 0 : i32
    %c0_i32_1 = arith.constant 0 : i32
    return %c0_i32, %c0_i32_0 : i32, i32
  }
  func.func @transform_2(%arg0: i32) -> (i32, i32) {
    %c0_i32 = arith.constant 0 : i32
    %c0_i32_0 = arith.constant 0 : i32
    %c0_i32_1 = arith.constant 0 : i32
    return %c0_i32, %c0_i32_0 : i32, i32
  }
  func.func @transform_3(%arg0: i32) -> (i32, i32) {
    %c0_i32 = arith.constant 0 : i32
    %c0_i32_0 = arith.constant 0 : i32
    %c0_i32_1 = arith.constant 0 : i32
    return %c0_i32, %c0_i32_0 : i32, i32
  }
  func.func @transform_4(%arg0: i32) -> (i32, i32) {
    %c0_i32 = arith.constant 0 : i32
    %c0_i32_0 = arith.constant 0 : i32
    %c0_i32_1 = arith.constant 0 : i32
    return %c0_i32, %c0_i32_0 : i32, i32
  }
  func.func @transform_5(%arg0: i32) -> (i32, i32) {
    %c0_i32 = arith.constant 0 : i32
    %c0_i32_0 = arith.constant 0 : i32
    return %arg0, %c0_i32 : i32, i32
  }
}

</mosaic_0001>

<bundles_post_ra>
// kernel: tpu_custom_call.1
= control target key start
LH: loop header
LB: loop body
LE: loop exit
PB: predicated region body
PF: predicated region fallthrough
CT: control target
= control target key end

     0   :  { %10 = vsyncpa [#allocation3], 0  ;;  %s6432_s0 = inlined_call_operand.hbm [shape: f32[16,6272], index: 0, kind: input, shape index: {}]   ;;  %s6433_s1 = inlined_call_operand.hbm [shape: bf16[6272,128], index: 1, kind: input, shape index: {}]   ;;  %s6434_s2 = inlined_call_operand.hbm [shape: f32[1,128], index: 2, kind: input, shape index: {}]   ;;  %s6435_s3 = inlined_call_operand.hbm [shape: bf16[128,128], index: 3, kind: input, shape index: {}]   ;;  %s6436_s4 = inlined_call_operand.hbm [shape: f32[1,128], index: 4, kind: input, shape index: {}]   ;;  %s6437_s5 = inlined_call_operand.hbm [shape: f32[16,128], index: 5, kind: output, shape index: {}]  }
   0x1   :  { %11 = vsyncpa [#allocation6], 0 }
   0x2   :  { %12 = vsyncpa [#allocation9], 0  ;;  %s31_s20 = sshll.u32 %s6433_s1, 4  ;;  %s32_s20 = int_to_ptr.hbm [resolvable:$true] %s31_s20 }
   0x3   :  { %13 = vsyncpa [#allocation4], 0  ;;  %s6342_s21 = smov [#allocation5]   ;;  %s55_s25 = sshll.u32 %s6435_s3, 4  ;;  %s56_s25 = int_to_ptr.hbm [resolvable:$true] %s55_s25 }
   0x4   :  { %s33_s22 = sshll.u32 %s6342_s21, 4  ;;  %s6343_s26 = smov 64   ;;  %s34_s22 = int_to_ptr.vmem [resolvable:$true] %s33_s22 }
   0x5   :  { %s6344_s27 = smov 4   ;;  %s6345_s28 = smov [#allocation8]  }
   0x6   :  { %39 = dma.hbm_to_vmem [thread:$0]  %s32_s20, 50176, %s34_s22, [#allocation6], %s6343_s26, %s6343_s26, %s6344_s27  }
   0x7   :  { %s57_s29 = sshll.u32 %s6345_s28, 4  ;;  %s18_s7 = sshll.u32 %s6432_s0, 4  ;;  %s58_s29 = int_to_ptr.vmem [resolvable:$true] %s57_s29  ;;  %s19_s7 = int_to_ptr.hbm [resolvable:$true] %s18_s7 }
   0x8   :  { %63 = dma.hbm_to_vmem [thread:$0]  %s56_s25, 1024, %s58_s29, [#allocation9], %s6343_s26, %s6343_s26, %s6344_s27  }
   0x9   :  { %s6346_s1 = smov [#allocation2]   ;;  %s45_s3 = sshll.u32 %s6434_s2, 4  ;;  %s46_s3 = int_to_ptr.hbm [resolvable:$true] %s45_s3 }
   0xa   :  { %s20_s8 = sshll.u32 %s6346_s1, 4  ;;  %s6347_s11 = smov 6272   ;;  %s21_s8 = int_to_ptr.vmem [resolvable:$true] %s20_s8 }
   0xb   :  { %s6348_s12 = smov 392   ;;  %s6349_s13 = smov [#allocation7]  }
   0xc   :  { %26 = dma.hbm_to_vmem [thread:$0]  %s19_s7, 12544, %s21_s8, [#allocation3], %s6347_s11, %s6347_s11, %s6348_s12  }
   0xd   :  { %s47_s14 = sshll.u32 %s6349_s13, 4  ;;  %s69_s0 = sshll.u32 %s6436_s4, 4  ;;  %s48_s14 = int_to_ptr.vmem [resolvable:$true] %s47_s14  ;;  %s70_s0 = int_to_ptr.hbm [resolvable:$true] %s69_s0 }
   0xe   :  { %50 = dma.hbm_to_vmem [thread:$0]  %s46_s3, 16, %s48_s14, [#allocation6]  }
   0xf   :  { %s6350_s17 = smov [#allocation10]  }
  0x10   :  { %s71_s18 = sshll.u32 %s6350_s17, 4  ;;  %s72_s18 = int_to_ptr.vmem [resolvable:$true] %s71_s18 }
  0x11   :  { %74 = dma.hbm_to_vmem [thread:$0]  %s70_s0, 16, %s72_s18, [#allocation9]  }
  0x12   :  { %6334 = dma.done.wait [#allocation3], 12544  }
  0x13   :  { %6335 = vsyncadd [#allocation3], 4294954752 }
  0x14   :  { %6336 = dma.done.wait [#allocation6], 50192  }
  0x15   :  { %6337 = vsyncadd [#allocation6], 4294917104 }
  0x16   :  { %6338 = dma.done.wait [#allocation9], 1040  }
  0x17   :  { %6339 = vsyncadd [#allocation9], 4294966256  ;;  %v5783_v0 = vld [vmem:[#allocation5 + $0x38] sm:$0xff]  ;;  %v5782_v4 = vld [vmem:[#allocation5 + $0x30] sm:$0xff]  ;;  %s6351_s2 = smov [#allocation11]   ;;  %s4161_s21 = sshll.u32 %s6437_s5, 4  ;;  %s4162_s21 = int_to_ptr.hbm [resolvable:$true] %s4161_s21 }
  0x18   :  { %v5799_v1 = vld [vmem:[#allocation5 + $0xb8] sm:$0xff]  ;;  %3382 = vmatpush.bf16.msra.mxu0 %v5783_v0  ;;  %v5798_v5 = vld [vmem:[#allocation5 + $0xb0] sm:$0xff]  ;;  %v5781_v8 = vld [vmem:[#allocation5 + $0x28] sm:$0xff]  ;;  %s4159_s4 = sshll.u32 %s6351_s2, 4  ;;  %s6352_s22 = smov 128   ;;  %s4160_s4 = int_to_ptr.vmem [resolvable:$true] %s4159_s4 }
  0x19   :  { %v5791_v2 = vld [vmem:[#allocation5 + $0x78] sm:$0xff]  ;;  %3410 = vmatpush.bf16.msra.mxu2 %v5799_v1  ;;  %v5790_v6 = vld [vmem:[#allocation5 + $0x70] sm:$0xff]  ;;  %v5797_v9 = vld [vmem:[#allocation5 + $0xa8] sm:$0xff]  ;;  %s6353_s23 = smov 8  }
  0x1a   :  { %v5807_v3 = vld [vmem:[#allocation5 + $0xf8] sm:$0xff]  ;;  %3396 = vmatpush.bf16.msra.mxu1 %v5791_v2  ;;  %v5806_v7 = vld [vmem:[#allocation5 + $0xf0] sm:$0xff]  ;;  %v5789_v10 = vld [vmem:[#allocation5 + $0x68] sm:$0xff] }
  0x1b   :  { %3424 = vmatpush.bf16.msra.mxu3 %v5807_v3  ;;  %v5805_v11 = vld [vmem:[#allocation5 + $0xe8] sm:$0xff]  ;;  %v5780_v12 = vld [vmem:[#allocation5 + $0x20] sm:$0xff]  ;;  %v5779_v16 = vld [vmem:[#allocation5 + $0x18] sm:$0xff] }
  0x1c   :  { %3383 = vmatpush.bf16.msra.mxu0 %v5782_v4  ;;  %v5796_v13 = vld [vmem:[#allocation5 + $0xa0] sm:$0xff]  ;;  %v5795_v17 = vld [vmem:[#allocation5 + $0x98] sm:$0xff]  ;;  %v5778_v20 = vld [vmem:[#allocation5 + $0x10] sm:$0xff] }
  0x1d   :  { %3411 = vmatpush.bf16.msra.mxu2 %v5798_v5  ;;  %v5788_v14 = vld [vmem:[#allocation5 + $0x60] sm:$0xff]  ;;  %v5787_v18 = vld [vmem:[#allocation5 + $0x58] sm:$0xff]  ;;  %v5794_v21 = vld [vmem:[#allocation5 + $0x90] sm:$0xff] }
  0x1e   :  { %3397 = vmatpush.bf16.msra.mxu1 %v5790_v6  ;;  %v5804_v15 = vld [vmem:[#allocation5 + $0xe0] sm:$0xff]  ;;  %v5803_v19 = vld [vmem:[#allocation5 + $0xd8] sm:$0xff]  ;;  %v5786_v22 = vld [vmem:[#allocation5 + $0x50] sm:$0xff] }
  0x1f   :  { %3425 = vmatpush.bf16.msra.mxu3 %v5806_v7  ;;  %v5802_v23 = vld [vmem:[#allocation5 + $0xd0] sm:$0xff]  ;;  %v5777_v24 = vld [vmem:[#allocation5 + $0x8] sm:$0xff]  ;;  %v5776_v28 = vld [vmem:[#allocation5] sm:$0xff] }
  0x20   :  { %3384 = vmatpush.bf16.msra.mxu0 %v5781_v8  ;;  %v5793_v25 = vld [vmem:[#allocation5 + $0x88] sm:$0xff]  ;;  %v5792_v29 = vld [vmem:[#allocation5 + $0x80] sm:$0xff]  ;;  %v5815_v30 = vld [vmem:[#allocation5 + $0x138] sm:$0xff] }
  0x21   :  { %3412 = vmatpush.bf16.msra.mxu2 %v5797_v9  ;;  %v5785_v26 = vld [vmem:[#allocation5 + $0x48] sm:$0xff]  ;;  %v5831_v31 = vld [vmem:[#allocation5 + $0x1b8] sm:$0xff]  ;;  %v5784_v32 = vld [vmem:[#allocation5 + $0x40] sm:$0xff] }
  0x22   :  { %3398 = vmatpush.bf16.msra.mxu1 %v5789_v10  ;;  %v5801_v27 = vld [vmem:[#allocation5 + $0xc8] sm:$0xff]  ;;  %v5800_v33 = vld [vmem:[#allocation5 + $0xc0] sm:$0xff]  ;;  %v95_v34 = vld [vmem:[#allocation2] sm:$0xff] }
  0x23   :  { %3426 = vmatpush.bf16.msra.mxu3 %v5805_v11  ;;  %v144_v35 = vld [vmem:[#allocation2 + $0x188] sm:$0xff]  ;;  %v97_v36 = vld [vmem:[#allocation2 + $0x10] sm:$0xff]  ;;  %v146_v37 = vld [vmem:[#allocation2 + $0x198] sm:$0xff] }
  0x24   :  { %3385 = vmatpush.bf16.msra.mxu0 %v5780_v12  ;;  %v5823_v38 = vld [vmem:[#allocation5 + $0x178] sm:$0xff]  ;;  %v145_v41 = vld [vmem:[#allocation2 + $0x190] sm:$0xff]  ;;  %v98_v42 = vld [vmem:[#allocation2 + $0x18] sm:$0xff]  ;;  %v193_v44 = vpack.c.bf16 %v144_v35, %v95_v34  ;;  %v195_v45 = vpack.c.bf16 %v146_v37, %v97_v36 }
  0x25   :  { %3413 = vmatpush.bf16.msra.mxu2 %v5796_v13  ;;  %v5839_v39 = vld [vmem:[#allocation5 + $0x1f8] sm:$0xff]  ;;  %v147_v43 = vld [vmem:[#allocation2 + $0x1a0] sm:$0xff]  ;;  %v5813_v52 = vld [vmem:[#allocation5 + $0x128] sm:$0xff] }
  0x26   :  { %3399 = vmatpush.bf16.msra.mxu1 %v5788_v14  ;;  %v96_v40 = vld [vmem:[#allocation2 + $0x8] sm:$0xff]  ;;  %v5814_v46 = vld [vmem:[#allocation5 + $0x130] sm:$0xff]  ;;  %v196_v49 = vpack.c.bf16 %v147_v43, %v98_v42  ;;  %v5829_v53 = vld [vmem:[#allocation5 + $0x1a8] sm:$0xff] }
  0x27   :  { %3427 = vmatpush.bf16.msra.mxu3 %v5804_v15  ;;  %v5830_v47 = vld [vmem:[#allocation5 + $0x1b0] sm:$0xff]  ;;  %v194_v48 = vpack.c.bf16 %v145_v41, %v96_v40  ;;  %v5821_v54 = vld [vmem:[#allocation5 + $0x168] sm:$0xff]  ;;  %v5812_v56 = vld [vmem:[#allocation5 + $0x120] sm:$0xff] }
  0x28   :  { %3386 = vmatpush.bf16.msra.mxu0 %v5779_v16  ;;  %v5822_v50 = vld [vmem:[#allocation5 + $0x170] sm:$0xff]  ;;  %v5837_v55 = vld [vmem:[#allocation5 + $0x1e8] sm:$0xff]  ;;  %v5828_v57 = vld [vmem:[#allocation5 + $0x1a0] sm:$0xff] }
  0x29   :  { %3414 = vmatpush.bf16.msra.mxu2 %v5795_v17  ;;  %v5838_v51 = vld [vmem:[#allocation5 + $0x1f0] sm:$0xff]  ;;  %v5820_v58 = vld [vmem:[#allocation5 + $0x160] sm:$0xff]  ;;  %v5811_v60 = vld [vmem:[#allocation5 + $0x118] sm:$0xff] }
  0x2a   :  { %3400 = vmatpush.bf16.msra.mxu1 %v5787_v18  ;;  %v5836_v59 = vld [vmem:[#allocation5 + $0x1e0] sm:$0xff]  ;;  %v5827_v61 = vld [vmem:[#allocation5 + $0x198] sm:$0xff]  ;;  %v5810_v0 = vld [vmem:[#allocation5 + $0x110] sm:$0xff] }
  0x2b   :  { %3428 = vmatpush.bf16.msra.mxu3 %v5803_v19  ;;  %v5819_v62 = vld [vmem:[#allocation5 + $0x158] sm:$0xff]  ;;  %v5826_v1 = vld [vmem:[#allocation5 + $0x190] sm:$0xff]  ;;  %v5809_v4 = vld [vmem:[#allocation5 + $0x108] sm:$0xff] }
  0x2c   :  { %3387 = vmatpush.bf16.msra.mxu0 %v5778_v20  ;;  %v5835_v63 = vld [vmem:[#allocation5 + $0x1d8] sm:$0xff]  ;;  %v5818_v2 = vld [vmem:[#allocation5 + $0x150] sm:$0xff]  ;;  %v5825_v5 = vld [vmem:[#allocation5 + $0x188] sm:$0xff] }
  0x2d   :  { %3415 = vmatpush.bf16.msra.mxu2 %v5794_v21  ;;  %v5834_v3 = vld [vmem:[#allocation5 + $0x1d0] sm:$0xff]  ;;  %v5817_v6 = vld [vmem:[#allocation5 + $0x148] sm:$0xff]  ;;  %v5808_v8 = vld [vmem:[#allocation5 + $0x100] sm:$0xff] }
  0x2e   :  { %3401 = vmatpush.bf16.msra.mxu1 %v5786_v22  ;;  %v5833_v7 = vld [vmem:[#allocation5 + $0x1c8] sm:$0xff]  ;;  %v5824_v9 = vld [vmem:[#allocation5 + $0x180] sm:$0xff]  ;;  %v5847_v10 = vld [vmem:[#allocation5 + $0x238] sm:$0xff] }
  0x2f   :  { %3429 = vmatpush.bf16.msra.mxu3 %v5802_v23  ;;  %v5863_v11 = vld [vmem:[#allocation5 + $0x2b8] sm:$0xff]  ;;  %v99_v12 = vld [vmem:[#allocation2 + $0x20] sm:$0xff]  ;;  %v101_v14 = vld [vmem:[#allocation2 + $0x30] sm:$0xff] }
  0x30   :  { %3388 = vmatpush.bf16.msra.mxu0 %v5777_v24  ;;  %v148_v13 = vld [vmem:[#allocation2 + $0x1a8] sm:$0xff]  ;;  %v150_v15 = vld [vmem:[#allocation2 + $0x1b8] sm:$0xff]  ;;  %v5816_v16 = vld [vmem:[#allocation5 + $0x140] sm:$0xff] }
  0x31   :  { %3416 = vmatpush.bf16.msra.mxu2 %v5793_v25  ;;  %v5832_v17 = vld [vmem:[#allocation5 + $0x1c0] sm:$0xff]  ;;  %v100_v18 = vld [vmem:[#allocation2 + $0x28] sm:$0xff]  ;;  %v102_v20 = vld [vmem:[#allocation2 + $0x38] sm:$0xff]  ;;  %v197_v22 = vpack.c.bf16 %v148_v13, %v99_v12  ;;  %v199_v23 = vpack.c.bf16 %v150_v15, %v101_v14 }
  0x32   :  { %3402 = vmatpush.bf16.msra.mxu1 %v5785_v26  ;;  %v149_v19 = vld [vmem:[#allocation2 + $0x1b0] sm:$0xff]  ;;  %v151_v21 = vld [vmem:[#allocation2 + $0x1c0] sm:$0xff]  ;;  %v5855_v24 = vld [vmem:[#allocation5 + $0x278] sm:$0xff] }
  0x33   :  { %3430 = vmatpush.bf16.msra.mxu3 %v5801_v27  ;;  %v5871_v25 = vld [vmem:[#allocation5 + $0x2f8] sm:$0xff]  ;;  %v198_v26 = vpack.c.bf16 %v149_v19, %v100_v18  ;;  %v200_v27 = vpack.c.bf16 %v151_v21, %v102_v20  ;;  %v5853_v34 = vld [vmem:[#allocation5 + $0x268] sm:$0xff]  ;;  %v5844_v36 = vld [vmem:[#allocation5 + $0x220] sm:$0xff] }
  0x34   :  { %3389 = vmatpush.bf16.msra.mxu0 %v5776_v28  ;;  %v5846_v28 = vld [vmem:[#allocation5 + $0x230] sm:$0xff]  ;;  %v5869_v35 = vld [vmem:[#allocation5 + $0x2e8] sm:$0xff]  ;;  %v5860_v37 = vld [vmem:[#allocation5 + $0x2a0] sm:$0xff] }
  0x35   :  { %3417 = vmatpush.bf16.msra.mxu2 %v5792_v29  ;;  %v5862_v29 = vld [vmem:[#allocation5 + $0x2b0] sm:$0xff]  ;;  %v5843_v40 = vld [vmem:[#allocation5 + $0x218] sm:$0xff]  ;;  %v5877_v12 = vld [vmem:[#allocation5 + $0x328] sm:$0xff] }
  0x36   :  { %3403 = vmatpush.bf16.msra.mxu1 %v5784_v32  ;;  %v5845_v32 = vld [vmem:[#allocation5 + $0x228] sm:$0xff]  ;;  %v5859_v41 = vld [vmem:[#allocation5 + $0x298] sm:$0xff]  ;;  %v5884_v18 = vld [vmem:[#allocation5 + $0x360] sm:$0xff] }
  0x37   :  { %3431 = vmatpush.bf16.msra.mxu3 %v5800_v33  ;;  %3390 = vmatmul.bf16.vlgmr.msra.gmra.mxu0 %v193_v44  ;;  %v5861_v33 = vld [vmem:[#allocation5 + $0x2a8] sm:$0xff]  ;;  %v5851_v42 = vld [vmem:[#allocation5 + $0x258] sm:$0xff]  ;;  %v5842_v44 = vld [vmem:[#allocation5 + $0x210] sm:$0xff] }
  0x38   :  { %3438 = vmatpush.bf16.msrb.mxu0 %v5815_v30  ;;  %3418 = vmatmul.bf16.vlgmr.msra.gmra.mxu2 %v195_v45  ;;  %v5854_v30 = vld [vmem:[#allocation5 + $0x270] sm:$0xff]  ;;  %v5867_v43 = vld [vmem:[#allocation5 + $0x2d8] sm:$0xff]  ;;  %v5893_v13 = vld [vmem:[#allocation5 + $0x3a8] sm:$0xff] }
  0x39   :  { %3466 = vmatpush.bf16.msrb.mxu2 %v5831_v31  ;;  %3404 = vmatmul.bf16.vlgmr.msra.gmra.mxu1 %v194_v48  ;;  %v5870_v31 = vld [vmem:[#allocation5 + $0x2f0] sm:$0xff]  ;;  %v5841_v48 = vld [vmem:[#allocation5 + $0x208] sm:$0xff]  ;;  %v5900_v19 = vld [vmem:[#allocation5 + $0x3e0] sm:$0xff] }
  0x3a   :  { %3452 = vmatpush.bf16.msrb.mxu1 %v5823_v38  ;;  %3432 = vmatmul.bf16.vlgmr.msra.gmra.mxu3 %v196_v49  ;;  %v5852_v38 = vld [vmem:[#allocation5 + $0x260] sm:$0xff]  ;;  %v5858_v45 = vld [vmem:[#allocation5 + $0x290] sm:$0xff]  ;;  %v5857_v49 = vld [vmem:[#allocation5 + $0x288] sm:$0xff] }
  0x3b   :  { %3480 = vmatpush.bf16.msrb.mxu3 %v5839_v39  ;;  %v5868_v39 = vld [vmem:[#allocation5 + $0x2e0] sm:$0xff]  ;;  %v5885_v14 = vld [vmem:[#allocation5 + $0x368] sm:$0xff]  ;;  %v5875_v20 = vld [vmem:[#allocation5 + $0x318] sm:$0xff] }
  0x3c   :  { %3439 = vmatpush.bf16.msrb.mxu0 %v5814_v46  ;;  %v5850_v46 = vld [vmem:[#allocation5 + $0x250] sm:$0xff]  ;;  %v5901_v15 = vld [vmem:[#allocation5 + $0x3e8] sm:$0xff]  ;;  %v5891_v21 = vld [vmem:[#allocation5 + $0x398] sm:$0xff] }
  0x3d   :  { %3467 = vmatpush.bf16.msrb.mxu2 %v5830_v47  ;;  %v5866_v47 = vld [vmem:[#allocation5 + $0x2d0] sm:$0xff] }
  0x3e   :  { %3453 = vmatpush.bf16.msrb.mxu1 %v5822_v50  ;;  %v5849_v50 = vld [vmem:[#allocation5 + $0x248] sm:$0xff] }
  0x3f   :  { %3481 = vmatpush.bf16.msrb.mxu3 %v5838_v51  ;;  %v5865_v51 = vld [vmem:[#allocation5 + $0x2c8] sm:$0xff] }
  0x40   :  { %3440 = vmatpush.bf16.msrb.mxu0 %v5813_v52  ;;  %v5840_v52 = vld [vmem:[#allocation5 + $0x200] sm:$0xff] }
  0x41   :  { %3468 = vmatpush.bf16.msrb.mxu2 %v5829_v53  ;;  %v5856_v53 = vld [vmem:[#allocation5 + $0x280] sm:$0xff] }
  0x42   :  { %3454 = vmatpush.bf16.msrb.mxu1 %v5821_v54  ;;  %v5879_v54 = vld [vmem:[#allocation5 + $0x338] sm:$0xff] }
  0x43   :  { %3482 = vmatpush.bf16.msrb.mxu3 %v5837_v55  ;;  %v5895_v55 = vld [vmem:[#allocation5 + $0x3b8] sm:$0xff] }
  0x44   :  { %3441 = vmatpush.bf16.msrb.mxu0 %v5812_v56  ;;  %v103_v56 = vld [vmem:[#allocation2 + $0x40] sm:$0xff] }
  0x45   :  { %3469 = vmatpush.bf16.msrb.mxu2 %v5828_v57  ;;  %v152_v57 = vld [vmem:[#allocation2 + $0x1c8] sm:$0xff] }
  0x46   :  { %3455 = vmatpush.bf16.msrb.mxu1 %v5820_v58  ;;  %v105_v58 = vld [vmem:[#allocation2 + $0x50] sm:$0xff] }
  0x47   :  { %3483 = vmatpush.bf16.msrb.mxu3 %v5836_v59  ;;  %v154_v59 = vld [vmem:[#allocation2 + $0x1d8] sm:$0xff] }
  0x48   :  { %3442 = vmatpush.bf16.msrb.mxu0 %v5811_v60  ;;  %v5848_v60 = vld [vmem:[#allocation5 + $0x240] sm:$0xff] }
  0x49   :  { %3470 = vmatpush.bf16.msrb.mxu2 %v5827_v61  ;;  %v5864_v61 = vld [vmem:[#allocation5 + $0x2c0] sm:$0xff] }
  0x4a   :  { %3456 = vmatpush.bf16.msrb.mxu1 %v5819_v62  ;;  %v104_v62 = vld [vmem:[#allocation2 + $0x48] sm:$0xff] }
  0x4b   :  { %3484 = vmatpush.bf16.msrb.mxu3 %v5835_v63  ;;  %v153_v63 = vld [vmem:[#allocation2 + $0x1d0] sm:$0xff] }
  0x4c   :  { %3443 = vmatpush.bf16.msrb.mxu0 %v5810_v0  ;;  %v106_v0 = vld [vmem:[#allocation2 + $0x58] sm:$0xff] }
  0x4d   :  { %3471 = vmatpush.bf16.msrb.mxu2 %v5826_v1  ;;  %v155_v1 = vld [vmem:[#allocation2 + $0x1e0] sm:$0xff] }
  0x4e   :  { %3457 = vmatpush.bf16.msrb.mxu1 %v5818_v2  ;;  %v201_v2 = vpack.c.bf16 %v152_v57, %v103_v56  ;;  %v5909_v56 = vld [vmem:[#allocation5 + $0x428] sm:$0xff] }
  0x4f   :  { %3485 = vmatpush.bf16.msrb.mxu3 %v5834_v3  ;;  %v203_v3 = vpack.c.bf16 %v154_v59, %v105_v58  ;;  %v5925_v57 = vld [vmem:[#allocation5 + $0x4a8] sm:$0xff] }
  0x50   :  { %3444 = vmatpush.bf16.msrb.mxu0 %v5809_v4  ;;  %v5887_v4 = vld [vmem:[#allocation5 + $0x378] sm:$0xff]  ;;  %v5917_v58 = vld [vmem:[#allocation5 + $0x468] sm:$0xff] }
  0x51   :  { %3472 = vmatpush.bf16.msrb.mxu2 %v5825_v5  ;;  %v5903_v5 = vld [vmem:[#allocation5 + $0x3f8] sm:$0xff]  ;;  %v5933_v59 = vld [vmem:[#allocation5 + $0x4e8] sm:$0xff] }
  0x52   :  { %3458 = vmatpush.bf16.msrb.mxu1 %v5817_v6  ;;  %v202_v6 = vpack.c.bf16 %v153_v63, %v104_v62  ;;  %v5916_v62 = vld [vmem:[#allocation5 + $0x460] sm:$0xff] }
  0x53   :  { %3486 = vmatpush.bf16.msrb.mxu3 %v5833_v7  ;;  %v204_v7 = vpack.c.bf16 %v155_v1, %v106_v0  ;;  %v5932_v63 = vld [vmem:[#allocation5 + $0x4e0] sm:$0xff]  ;;  %v5907_v0 = vld [vmem:[#allocation5 + $0x418] sm:$0xff] }
  0x54   :  { %3445 = vmatpush.bf16.msrb.mxu0 %v5808_v8  ;;  %v5878_v8 = vld [vmem:[#allocation5 + $0x330] sm:$0xff]  ;;  %v5923_v1 = vld [vmem:[#allocation5 + $0x498] sm:$0xff] }
  0x55   :  { %3473 = vmatpush.bf16.msrb.mxu2 %v5824_v9  ;;  %v5894_v9 = vld [vmem:[#allocation5 + $0x3b0] sm:$0xff] }
  0x56   :  { %3459 = vmatpush.bf16.msrb.mxu1 %v5816_v16  ;;  %v5876_v16 = vld [vmem:[#allocation5 + $0x320] sm:$0xff] }
  0x57   :  { %3487 = vmatpush.bf16.msrb.mxu3 %v5832_v17  ;;  %3446 = vmatmul.bf16.vlgmr.msrb.gmra.mxu0 %v197_v22  ;;  %v5892_v17 = vld [vmem:[#allocation5 + $0x3a0] sm:$0xff]  ;;  %v5883_v22 = vld [vmem:[#allocation5 + $0x358] sm:$0xff] }
  0x58   :  { %3494 = vmatpush.bf16.msra.mxu0 %v5847_v10  ;;  %3474 = vmatmul.bf16.vlgmr.msrb.gmra.mxu2 %v199_v23  ;;  %v5886_v10 = vld [vmem:[#allocation5 + $0x370] sm:$0xff]  ;;  %v5899_v23 = vld [vmem:[#allocation5 + $0x3d8] sm:$0xff] }
  0x59   :  { %3522 = vmatpush.bf16.msra.mxu2 %v5863_v11  ;;  %3460 = vmatmul.bf16.vlgmr.msrb.gmra.mxu1 %v198_v26  ;;  %v5902_v11 = vld [vmem:[#allocation5 + $0x3f0] sm:$0xff] }
  0x5a   :  { %3508 = vmatpush.bf16.msra.mxu1 %v5855_v24  ;;  %3488 = vmatmul.bf16.vlgmr.msrb.gmra.mxu3 %v200_v27  ;;  %v5874_v24 = vld [vmem:[#allocation5 + $0x310] sm:$0xff] }
  0x5b   :  { %3536 = vmatpush.bf16.msra.mxu3 %v5871_v25  ;;  %v5890_v25 = vld [vmem:[#allocation5 + $0x390] sm:$0xff] }
  0x5c   :  { %3495 = vmatpush.bf16.msra.mxu0 %v5846_v28  ;;  %v5882_v26 = vld [vmem:[#allocation5 + $0x350] sm:$0xff]  ;;  %v5873_v28 = vld [vmem:[#allocation5 + $0x308] sm:$0xff] }
  0x5d   :  { %3523 = vmatpush.bf16.msra.mxu2 %v5862_v29  ;;  %v5898_v27 = vld [vmem:[#allocation5 + $0x3d0] sm:$0xff]  ;;  %v5889_v29 = vld [vmem:[#allocation5 + $0x388] sm:$0xff] }
  0x5e   :  { %3509 = vmatpush.bf16.msra.mxu1 %v5854_v30  ;;  %v5881_v30 = vld [vmem:[#allocation5 + $0x348] sm:$0xff] }
  0x5f   :  { %3537 = vmatpush.bf16.msra.mxu3 %v5870_v31  ;;  %v5897_v31 = vld [vmem:[#allocation5 + $0x3c8] sm:$0xff] }
  0x60   :  { %3496 = vmatpush.bf16.msra.mxu0 %v5845_v32  ;;  %v5872_v32 = vld [vmem:[#allocation5 + $0x300] sm:$0xff] }
  0x61   :  { %3524 = vmatpush.bf16.msra.mxu2 %v5861_v33  ;;  %v5888_v33 = vld [vmem:[#allocation5 + $0x380] sm:$0xff] }
  0x62   :  { %3510 = vmatpush.bf16.msra.mxu1 %v5853_v34  ;;  %v5911_v34 = vld [vmem:[#allocation5 + $0x438] sm:$0xff] }
  0x63   :  { %3538 = vmatpush.bf16.msra.mxu3 %v5869_v35  ;;  %v5927_v35 = vld [vmem:[#allocation5 + $0x4b8] sm:$0xff] }
  0x64   :  { %3497 = vmatpush.bf16.msra.mxu0 %v5844_v36  ;;  %v107_v36 = vld [vmem:[#allocation2 + $0x60] sm:$0xff] }
  0x65   :  { %3525 = vmatpush.bf16.msra.mxu2 %v5860_v37  ;;  %v156_v37 = vld [vmem:[#allocation2 + $0x1e8] sm:$0xff] }
  0x66   :  { %3511 = vmatpush.bf16.msra.mxu1 %v5852_v38  ;;  %v109_v38 = vld [vmem:[#allocation2 + $0x70] sm:$0xff] }
  0x67   :  { %3539 = vmatpush.bf16.msra.mxu3 %v5868_v39  ;;  %v158_v39 = vld [vmem:[#allocation2 + $0x1f8] sm:$0xff] }
  0x68   :  { %3498 = vmatpush.bf16.msra.mxu0 %v5843_v40  ;;  %v5880_v40 = vld [vmem:[#allocation5 + $0x340] sm:$0xff] }
  0x69   :  { %3526 = vmatpush.bf16.msra.mxu2 %v5859_v41  ;;  %v5896_v41 = vld [vmem:[#allocation5 + $0x3c0] sm:$0xff] }
  0x6a   :  { %3512 = vmatpush.bf16.msra.mxu1 %v5851_v42  ;;  %v108_v42 = vld [vmem:[#allocation2 + $0x68] sm:$0xff] }
  0x6b   :  { %3540 = vmatpush.bf16.msra.mxu3 %v5867_v43  ;;  %v157_v43 = vld [vmem:[#allocation2 + $0x1f0] sm:$0xff] }
  0x6c   :  { %3499 = vmatpush.bf16.msra.mxu0 %v5842_v44  ;;  %v110_v44 = vld [vmem:[#allocation2 + $0x78] sm:$0xff] }
  0x6d   :  { %3527 = vmatpush.bf16.msra.mxu2 %v5858_v45  ;;  %v159_v45 = vld [vmem:[#allocation2 + $0x200] sm:$0xff] }
  0x6e   :  { %3513 = vmatpush.bf16.msra.mxu1 %v5850_v46  ;;  %v205_v46 = vpack.c.bf16 %v156_v37, %v107_v36  ;;  %v5941_v36 = vld [vmem:[#allocation5 + $0x528] sm:$0xff] }
  0x6f   :  { %3541 = vmatpush.bf16.msra.mxu3 %v5866_v47  ;;  %v207_v47 = vpack.c.bf16 %v158_v39, %v109_v38  ;;  %v5957_v37 = vld [vmem:[#allocation5 + $0x5a8] sm:$0xff]  ;;  %v6188_v38 = vld [vmem:[#allocation7] ss:$0 sm:$0xff] }
  0x70   :  { %3500 = vmatpush.bf16.msra.mxu0 %v5841_v48  ;;  %v5919_v48 = vld [vmem:[#allocation5 + $0x478] sm:$0xff]  ;;  %v5949_v39 = vld [vmem:[#allocation5 + $0x568] sm:$0xff] }
  0x71   :  { %3528 = vmatpush.bf16.msra.mxu2 %v5857_v49  ;;  %v5935_v49 = vld [vmem:[#allocation5 + $0x4f8] sm:$0xff] }
  0x72   :  { %3514 = vmatpush.bf16.msra.mxu1 %v5849_v50  ;;  %v206_v50 = vpack.c.bf16 %v157_v43, %v108_v42  ;;  %v5956_v42 = vld [vmem:[#allocation5 + $0x5a0] sm:$0xff] }
  0x73   :  { %3542 = vmatpush.bf16.msra.mxu3 %v5865_v51  ;;  %v208_v51 = vpack.c.bf16 %v159_v45, %v110_v44  ;;  %v5948_v45 = vld [vmem:[#allocation5 + $0x560] sm:$0xff] }
  0x74   :  { %3501 = vmatpush.bf16.msra.mxu0 %v5840_v52  ;;  %v5910_v52 = vld [vmem:[#allocation5 + $0x430] sm:$0xff] }
  0x75   :  { %3529 = vmatpush.bf16.msra.mxu2 %v5856_v53  ;;  %v5926_v53 = vld [vmem:[#allocation5 + $0x4b0] sm:$0xff] }
  0x76   :  { %3515 = vmatpush.bf16.msra.mxu1 %v5848_v60  ;;  %v5908_v60 = vld [vmem:[#allocation5 + $0x420] sm:$0xff] }
  0x77   :  { %3543 = vmatpush.bf16.msra.mxu3 %v5864_v61  ;;  %3502 = vmatmul.bf16.vlgmr.msra.gmra.mxu0 %v201_v2  ;;  %v5924_v61 = vld [vmem:[#allocation5 + $0x4a0] sm:$0xff]  ;;  %v5915_v2 = vld [vmem:[#allocation5 + $0x458] sm:$0xff] }
  0x78   :  { %3550 = vmatpush.bf16.msrb.mxu0 %v5879_v54  ;;  %3530 = vmatmul.bf16.vlgmr.msra.gmra.mxu2 %v203_v3  ;;  %v5918_v54 = vld [vmem:[#allocation5 + $0x470] sm:$0xff]  ;;  %v5931_v3 = vld [vmem:[#allocation5 + $0x4d8] sm:$0xff] }
  0x79   :  { %3578 = vmatpush.bf16.msrb.mxu2 %v5895_v55  ;;  %3516 = vmatmul.bf16.vlgmr.msra.gmra.mxu1 %v202_v6  ;;  %v5934_v55 = vld [vmem:[#allocation5 + $0x4f0] sm:$0xff] }
  0x7a   :  { %3564 = vmatpush.bf16.msrb.mxu1 %v5887_v4  ;;  %3544 = vmatmul.bf16.vlgmr.msra.gmra.mxu3 %v204_v7  ;;  %v5906_v4 = vld [vmem:[#allocation5 + $0x410] sm:$0xff] }
  0x7b   :  { %3592 = vmatpush.bf16.msrb.mxu3 %v5903_v5  ;;  %v5922_v5 = vld [vmem:[#allocation5 + $0x490] sm:$0xff] }
  0x7c   :  { %3551 = vmatpush.bf16.msrb.mxu0 %v5878_v8  ;;  %v5914_v6 = vld [vmem:[#allocation5 + $0x450] sm:$0xff]  ;;  %v5905_v8 = vld [vmem:[#allocation5 + $0x408] sm:$0xff] }
  0x7d   :  { %3579 = vmatpush.bf16.msrb.mxu2 %v5894_v9  ;;  %v5930_v7 = vld [vmem:[#allocation5 + $0x4d0] sm:$0xff]  ;;  %v5921_v9 = vld [vmem:[#allocation5 + $0x488] sm:$0xff] }
  0x7e   :  { %3565 = vmatpush.bf16.msrb.mxu1 %v5886_v10  ;;  %v5913_v10 = vld [vmem:[#allocation5 + $0x448] sm:$0xff] }
  0x7f   :  { %3593 = vmatpush.bf16.msrb.mxu3 %v5902_v11  ;;  %v5929_v11 = vld [vmem:[#allocation5 + $0x4c8] sm:$0xff] }
  0x80   :  { %3552 = vmatpush.bf16.msrb.mxu0 %v5877_v12  ;;  %v5904_v12 = vld [vmem:[#allocation5 + $0x400] sm:$0xff] }
  0x81   :  { %3580 = vmatpush.bf16.msrb.mxu2 %v5893_v13  ;;  %v5920_v13 = vld [vmem:[#allocation5 + $0x480] sm:$0xff] }
  0x82   :  { %3566 = vmatpush.bf16.msrb.mxu1 %v5885_v14  ;;  %v5943_v14 = vld [vmem:[#allocation5 + $0x538] sm:$0xff] }
  0x83   :  { %3594 = vmatpush.bf16.msrb.mxu3 %v5901_v15  ;;  %v5959_v15 = vld [vmem:[#allocation5 + $0x5b8] sm:$0xff] }
  0x84   :  { %3553 = vmatpush.bf16.msrb.mxu0 %v5876_v16  ;;  %v111_v16 = vld [vmem:[#allocation2 + $0x80] sm:$0xff] }
  0x85   :  { %3581 = vmatpush.bf16.msrb.mxu2 %v5892_v17  ;;  %v160_v17 = vld [vmem:[#allocation2 + $0x208] sm:$0xff] }
  0x86   :  { %3567 = vmatpush.bf16.msrb.mxu1 %v5884_v18  ;;  %v113_v18 = vld [vmem:[#allocation2 + $0x90] sm:$0xff] }
  0x87   :  { %3595 = vmatpush.bf16.msrb.mxu3 %v5900_v19  ;;  %v162_v19 = vld [vmem:[#allocation2 + $0x218] sm:$0xff] }
  0x88   :  { %3554 = vmatpush.bf16.msrb.mxu0 %v5875_v20  ;;  %v5912_v20 = vld [vmem:[#allocation5 + $0x440] sm:$0xff] }
  0x89   :  { %3582 = vmatpush.bf16.msrb.mxu2 %v5891_v21  ;;  %v5928_v21 = vld [vmem:[#allocation5 + $0x4c0] sm:$0xff] }
  0x8a   :  { %3568 = vmatpush.bf16.msrb.mxu1 %v5883_v22  ;;  %v112_v22 = vld [vmem:[#allocation2 + $0x88] sm:$0xff] }
  0x8b   :  { %3596 = vmatpush.bf16.msrb.mxu3 %v5899_v23  ;;  %v161_v23 = vld [vmem:[#allocation2 + $0x210] sm:$0xff] }
  0x8c   :  { %3555 = vmatpush.bf16.msrb.mxu0 %v5874_v24  ;;  %v114_v24 = vld [vmem:[#allocation2 + $0x98] sm:$0xff] }
  0x8d   :  { %3583 = vmatpush.bf16.msrb.mxu2 %v5890_v25  ;;  %v163_v25 = vld [vmem:[#allocation2 + $0x220] sm:$0xff] }
  0x8e   :  { %3569 = vmatpush.bf16.msrb.mxu1 %v5882_v26  ;;  %v209_v26 = vpack.c.bf16 %v160_v17, %v111_v16  ;;  %v5944_v16 = vld [vmem:[#allocation5 + $0x540] sm:$0xff] }
  0x8f   :  { %3597 = vmatpush.bf16.msrb.mxu3 %v5898_v27  ;;  %v211_v27 = vpack.c.bf16 %v162_v19, %v113_v18  ;;  %v5960_v17 = vld [vmem:[#allocation5 + $0x5c0] sm:$0xff]  ;;  %v116_v18 = vld [vmem:[#allocation2 + $0xa8] sm:$0xff] }
  0x90   :  { %3556 = vmatpush.bf16.msrb.mxu0 %v5873_v28  ;;  %v5951_v28 = vld [vmem:[#allocation5 + $0x578] sm:$0xff] }
  0x91   :  { %3584 = vmatpush.bf16.msrb.mxu2 %v5889_v29  ;;  %v5967_v29 = vld [vmem:[#allocation5 + $0x5f8] sm:$0xff] }
  0x92   :  { %3570 = vmatpush.bf16.msrb.mxu1 %v5881_v30  ;;  %v210_v30 = vpack.c.bf16 %v161_v23, %v112_v22  ;;  %v167_v22 = vld [vmem:[#allocation2 + $0x240] sm:$0xff] }
  0x93   :  { %3598 = vmatpush.bf16.msrb.mxu3 %v5897_v31  ;;  %v212_v31 = vpack.c.bf16 %v163_v25, %v114_v24  ;;  %v5983_v25 = vld [vmem:[#allocation5 + $0x678] sm:$0xff] }
  0x94   :  { %3557 = vmatpush.bf16.msrb.mxu0 %v5872_v32  ;;  %v5942_v32 = vld [vmem:[#allocation5 + $0x530] sm:$0xff] }
  0x95   :  { %3585 = vmatpush.bf16.msrb.mxu2 %v5888_v33  ;;  %v5958_v33 = vld [vmem:[#allocation5 + $0x5b0] sm:$0xff] }
  0x96   :  { %3571 = vmatpush.bf16.msrb.mxu1 %v5880_v40  ;;  %v5965_v40 = vld [vmem:[#allocation5 + $0x5e8] sm:$0xff] }
  0x97   :  { %3599 = vmatpush.bf16.msrb.mxu3 %v5896_v41  ;;  %3558 = vmatmul.bf16.vlgmr.msrb.gmra.mxu0 %v205_v46  ;;  %v5940_v41 = vld [vmem:[#allocation5 + $0x520] sm:$0xff] }
  0x98   :  { %3606 = vmatpush.bf16.msra.mxu0 %v5911_v34  ;;  %3586 = vmatmul.bf16.vlgmr.msrb.gmra.mxu2 %v207_v47  ;;  %v5950_v34 = vld [vmem:[#allocation5 + $0x570] sm:$0xff]  ;;  %v5964_v46 = vld [vmem:[#allocation5 + $0x5e0] sm:$0xff] }
  0x99   :  { %3634 = vmatpush.bf16.msra.mxu2 %v5927_v35  ;;  %3572 = vmatmul.bf16.vlgmr.msrb.gmra.mxu1 %v206_v50  ;;  %v5966_v35 = vld [vmem:[#allocation5 + $0x5f0] sm:$0xff]  ;;  %v5955_v50 = vld [vmem:[#allocation5 + $0x598] sm:$0xff] }
  0x9a   :  { %3620 = vmatpush.bf16.msra.mxu1 %v5919_v48  ;;  %3600 = vmatmul.bf16.vlgmr.msrb.gmra.mxu3 %v208_v51  ;;  %v5947_v51 = vld [vmem:[#allocation5 + $0x558] sm:$0xff] }
  0x9b   :  { %3648 = vmatpush.bf16.msra.mxu3 %v5935_v49  ;;  %v5939_v49 = vld [vmem:[#allocation5 + $0x518] sm:$0xff] }
  0x9c   :  { %3607 = vmatpush.bf16.msra.mxu0 %v5910_v52  ;;  %v5963_v52 = vld [vmem:[#allocation5 + $0x5d8] sm:$0xff] }
  0x9d   :  { %3635 = vmatpush.bf16.msra.mxu2 %v5926_v53 }
  0x9e   :  { %3621 = vmatpush.bf16.msra.mxu1 %v5918_v54 }
  0x9f   :  { %3649 = vmatpush.bf16.msra.mxu3 %v5934_v55  ;;  %v5938_v55 = vld [vmem:[#allocation5 + $0x510] sm:$0xff] }
  0xa0   :  { %3608 = vmatpush.bf16.msra.mxu0 %v5909_v56  ;;  %v5954_v56 = vld [vmem:[#allocation5 + $0x590] sm:$0xff] }
  0xa1   :  { %3636 = vmatpush.bf16.msra.mxu2 %v5925_v57 }
  0xa2   :  { %3622 = vmatpush.bf16.msra.mxu1 %v5917_v58 }
  0xa3   :  { %3650 = vmatpush.bf16.msra.mxu3 %v5933_v59 }
  0xa4   :  { %3609 = vmatpush.bf16.msra.mxu0 %v5908_v60 }
  0xa5   :  { %3637 = vmatpush.bf16.msra.mxu2 %v5924_v61  ;;  %v5946_v61 = vld [vmem:[#allocation5 + $0x550] sm:$0xff] }
  0xa6   :  { %3623 = vmatpush.bf16.msra.mxu1 %v5916_v62  ;;  %v5962_v62 = vld [vmem:[#allocation5 + $0x5d0] sm:$0xff] }
  0xa7   :  { %3651 = vmatpush.bf16.msra.mxu3 %v5932_v63 }
  0xa8   :  { %3610 = vmatpush.bf16.msra.mxu0 %v5907_v0 }
  0xa9   :  { %3638 = vmatpush.bf16.msra.mxu2 %v5923_v1  ;;  %v5937_v1 = vld [vmem:[#allocation5 + $0x508] sm:$0xff] }
  0xaa   :  { %3624 = vmatpush.bf16.msra.mxu1 %v5915_v2  ;;  %v5953_v2 = vld [vmem:[#allocation5 + $0x588] sm:$0xff] }
  0xab   :  { %3652 = vmatpush.bf16.msra.mxu3 %v5931_v3  ;;  %v5945_v3 = vld [vmem:[#allocation5 + $0x548] sm:$0xff] }
  0xac   :  { %3611 = vmatpush.bf16.msra.mxu0 %v5906_v4  ;;  %v5961_v4 = vld [vmem:[#allocation5 + $0x5c8] sm:$0xff] }
  0xad   :  { %3639 = vmatpush.bf16.msra.mxu2 %v5922_v5  ;;  %v5936_v5 = vld [vmem:[#allocation5 + $0x500] sm:$0xff] }
  0xae   :  { %3625 = vmatpush.bf16.msra.mxu1 %v5914_v6  ;;  %v5952_v6 = vld [vmem:[#allocation5 + $0x580] sm:$0xff] }
  0xaf   :  { %3653 = vmatpush.bf16.msra.mxu3 %v5930_v7 }
  0xb0   :  { %3612 = vmatpush.bf16.msra.mxu0 %v5905_v8  ;;  %v5975_v8 = vld [vmem:[#allocation5 + $0x638] sm:$0xff] }
  0xb1   :  { %3640 = vmatpush.bf16.msra.mxu2 %v5921_v9  ;;  %v5991_v9 = vld [vmem:[#allocation5 + $0x6b8] sm:$0xff] }
  0xb2   :  { %3626 = vmatpush.bf16.msra.mxu1 %v5913_v10  ;;  %v115_v10 = vld [vmem:[#allocation2 + $0xa0] sm:$0xff] }
  0xb3   :  { %3654 = vmatpush.bf16.msra.mxu3 %v5929_v11 }
  0xb4   :  { %3613 = vmatpush.bf16.msra.mxu0 %v5904_v12  ;;  %v3391_v43 = vpop.f32.mrf.mxu0  ;;  %v164_v12 = vld [vmem:[#allocation2 + $0x228] sm:$0xff] }
  0xb5   :  { %3641 = vmatpush.bf16.msra.mxu2 %v5920_v13  ;;  %v3392_v44 = vadd.f32 %v6188_v38, %v3391_v43  ;;  %v117_v13 = vld [vmem:[#allocation2 + $0xb0] sm:$0xff]  ;;  %v213_v23 = vpack.c.bf16 %v164_v12, %v115_v10  ;;  %v168_v10 = vld [vmem:[#allocation2 + $0x248] sm:$0xff]  ;;  %v170_v12 = vld [vmem:[#allocation2 + $0x258] sm:$0xff] }
  0xb6   :  { %3627 = vmatpush.bf16.msra.mxu1 %v5912_v20  ;;  %v3405_v47 = vpop.f32.mrf.mxu1  ;;  %v165_v20 = vld [vmem:[#allocation2 + $0x230] sm:$0xff] }
  0xb7   :  { %3655 = vmatpush.bf16.msra.mxu3 %v5928_v21  ;;  %3614 = vmatmul.bf16.vlgmr.msra.gmra.mxu0 %v209_v26  ;;  %v3406_v48 = vadd.f32 %v3405_v47, %v3392_v44  ;;  %v118_v21 = vld [vmem:[#allocation2 + $0xb8] sm:$0xff]  ;;  %v5999_v26 = vld [vmem:[#allocation5 + $0x6f8] sm:$0xff]  ;;  %v5980_v43 = vld [vmem:[#allocation5 + $0x660] sm:$0xff] }
  0xb8   :  { %3662 = vmatpush.bf16.msrb.mxu0 %v5943_v14  ;;  %3642 = vmatmul.bf16.vlgmr.msra.gmra.mxu2 %v211_v27  ;;  %v166_v14 = vld [vmem:[#allocation2 + $0x238] sm:$0xff]  ;;  %v214_v27 = vpack.c.bf16 %v165_v20, %v116_v18  ;;  %v5996_v44 = vld [vmem:[#allocation5 + $0x6e0] sm:$0xff]  ;;  %v171_v18 = vld [vmem:[#allocation2 + $0x260] sm:$0xff] }
  0xb9   :  { %3690 = vmatpush.bf16.msrb.mxu2 %v5959_v15  ;;  %3628 = vmatmul.bf16.vlgmr.msra.gmra.mxu1 %v210_v30  ;;  %v215_v24 = vpack.c.bf16 %v166_v14, %v117_v13  ;;  %v5990_v30 = vld [vmem:[#allocation5 + $0x6b0] sm:$0xff]  ;;  %v5976_v13 = vld [vmem:[#allocation5 + $0x640] sm:$0xff] }
  0xba   :  { %3676 = vmatpush.bf16.msrb.mxu1 %v5951_v28  ;;  %3656 = vmatmul.bf16.vlgmr.msra.gmra.mxu3 %v212_v31  ;;  %v216_v28 = vpack.c.bf16 %v167_v22, %v118_v21  ;;  %v5982_v31 = vld [vmem:[#allocation5 + $0x670] sm:$0xff]  ;;  %v5992_v14 = vld [vmem:[#allocation5 + $0x6c0] sm:$0xff]  ;;  %v6015_v21 = vld [vmem:[#allocation5 + $0x778] sm:$0xff] }
  0xbb   :  { %3704 = vmatpush.bf16.msrb.mxu3 %v5967_v29  ;;  %v3419_v53 = vpop.f32.mrf.mxu2  ;;  %v5974_v29 = vld [vmem:[#allocation5 + $0x630] sm:$0xff]  ;;  %v6031_v22 = vld [vmem:[#allocation5 + $0x7f8] sm:$0xff] }
  0xbc   :  { %3663 = vmatpush.bf16.msrb.mxu0 %v5942_v32  ;;  %v3420_v54 = vadd.f32 %v3419_v53, %v3406_v48  ;;  %v3393_v57 = vpop.f32.mrf.mxu0  ;;  %v5998_v32 = vld [vmem:[#allocation5 + $0x6f0] sm:$0xff] }
  0xbd   :  { %3691 = vmatpush.bf16.msrb.mxu2 %v5958_v33  ;;  %v3433_v58 = vpop.f32.mrf.mxu3  ;;  %v3394_v59 = vadd.f32 %v6188_v38, %v3393_v57  ;;  %v5973_v33 = vld [vmem:[#allocation5 + $0x628] sm:$0xff] }
  0xbe   :  { %3677 = vmatpush.bf16.msrb.mxu1 %v5950_v34  ;;  %v6399_v60 = vadd.f32 %v3433_v58, %v3420_v54  ;;  %v3407_v63 = vpop.f32.mrf.mxu1  ;;  %v5989_v34 = vld [vmem:[#allocation5 + $0x6a8] sm:$0xff] }
  0xbf   :  { %3705 = vmatpush.bf16.msrb.mxu3 %v5966_v35  ;;  %v3408_v0 = vadd.f32 %v3407_v63, %v3394_v59  ;;  %v5981_v35 = vld [vmem:[#allocation5 + $0x668] sm:$0xff]  ;;  %v5978_v59 = vld [vmem:[#allocation5 + $0x650] sm:$0xff] }
  0xc0   :  { %3664 = vmatpush.bf16.msrb.mxu0 %v5941_v36  ;;  %v5997_v36 = vld [vmem:[#allocation5 + $0x6e8] sm:$0xff] }
  0xc1   :  { %3692 = vmatpush.bf16.msrb.mxu2 %v5957_v37 }
  0xc2   :  { %3678 = vmatpush.bf16.msrb.mxu1 %v5949_v39  ;;  %v5972_v39 = vld [vmem:[#allocation5 + $0x620] sm:$0xff] }
  0xc3   :  { %3706 = vmatpush.bf16.msrb.mxu3 %v5965_v40  ;;  %v3421_v7 = vpop.f32.mrf.mxu2  ;;  %v5988_v40 = vld [vmem:[#allocation5 + $0x6a0] sm:$0xff] }
  0xc4   :  { %3665 = vmatpush.bf16.msrb.mxu0 %v5940_v41  ;;  %v3422_v11 = vadd.f32 %v3421_v7, %v3408_v0  ;;  %v6007_v7 = vld [vmem:[#allocation5 + $0x738] sm:$0xff] }
  0xc5   :  { %3693 = vmatpush.bf16.msrb.mxu2 %v5956_v42  ;;  %v3435_v15 = vpop.f32.mrf.mxu3 }
  0xc6   :  { %3679 = vmatpush.bf16.msrb.mxu1 %v5948_v45  ;;  %v3436_v19 = vadd.f32 %v3435_v15, %v3422_v11  ;;  %v5971_v45 = vld [vmem:[#allocation5 + $0x618] sm:$0xff]  ;;  %v121_v11 = vld [vmem:[#allocation2 + $0xd0] sm:$0xff] }
  0xc7   :  { %3707 = vmatpush.bf16.msrb.mxu3 %v5964_v46  ;;  %v5987_v46 = vld [vmem:[#allocation5 + $0x698] sm:$0xff]  ;;  %v219_v20 = vpack.c.bf16 %v170_v12, %v121_v11  ;;  %v173_v12 = vld [vmem:[#allocation2 + $0x270] sm:$0xff] }
  0xc8   :  { %3666 = vmatpush.bf16.msrb.mxu0 %v5939_v49  ;;  %v5979_v49 = vld [vmem:[#allocation5 + $0x658] sm:$0xff] }
  0xc9   :  { %3694 = vmatpush.bf16.msrb.mxu2 %v5955_v50  ;;  %v5995_v50 = vld [vmem:[#allocation5 + $0x6d8] sm:$0xff] }
  0xca   :  { %3680 = vmatpush.bf16.msrb.mxu1 %v5947_v51  ;;  %v120_v15 = vld [vmem:[#allocation2 + $0xc8] sm:$0xff] }
  0xcb   :  { %3708 = vmatpush.bf16.msrb.mxu3 %v5963_v52  ;;  %v124_v11 = vld [vmem:[#allocation2 + $0xe8] sm:$0xff] }
  0xcc   :  { %3667 = vmatpush.bf16.msrb.mxu0 %v5938_v55  ;;  %v5970_v55 = vld [vmem:[#allocation5 + $0x610] sm:$0xff] }
  0xcd   :  { %3695 = vmatpush.bf16.msrb.mxu2 %v5954_v56  ;;  %v5986_v56 = vld [vmem:[#allocation5 + $0x690] sm:$0xff] }
  0xce   :  { %3681 = vmatpush.bf16.msrb.mxu1 %v5946_v61  ;;  %v5969_v61 = vld [vmem:[#allocation5 + $0x608] sm:$0xff] }
  0xcf   :  { %3709 = vmatpush.bf16.msrb.mxu3 %v5962_v62  ;;  %v5985_v62 = vld [vmem:[#allocation5 + $0x688] sm:$0xff] }
  0xd0   :  { %3668 = vmatpush.bf16.msrb.mxu0 %v5937_v1  ;;  %v5977_v1 = vld [vmem:[#allocation5 + $0x648] sm:$0xff] }
  0xd1   :  { %3696 = vmatpush.bf16.msrb.mxu2 %v5953_v2  ;;  %v5993_v2 = vld [vmem:[#allocation5 + $0x6c8] sm:$0xff] }
  0xd2   :  { %3682 = vmatpush.bf16.msrb.mxu1 %v5945_v3 }
  0xd3   :  { %3710 = vmatpush.bf16.msrb.mxu3 %v5961_v4  ;;  %v5968_v4 = vld [vmem:[#allocation5 + $0x600] sm:$0xff] }
  0xd4   :  { %3669 = vmatpush.bf16.msrb.mxu0 %v5936_v5  ;;  %v3447_v37 = vpop.f32.mrf.mxu0  ;;  %v5984_v5 = vld [vmem:[#allocation5 + $0x680] sm:$0xff] }
  0xd5   :  { %3697 = vmatpush.bf16.msrb.mxu2 %v5952_v6  ;;  %v3448_v38 = vadd.f32 %v3447_v37, %v6399_v60  ;;  %v5994_v60 = vld [vmem:[#allocation5 + $0x6d0] sm:$0xff] }
  0xd6   :  { %3683 = vmatpush.bf16.msrb.mxu1 %v5944_v16  ;;  %v3461_v41 = vpop.f32.mrf.mxu1  ;;  %v169_v16 = vld [vmem:[#allocation2 + $0x250] sm:$0xff] }
  0xd7   :  { %3711 = vmatpush.bf16.msrb.mxu3 %v5960_v17  ;;  %3670 = vmatmul.bf16.vlgmr.msrb.gmra.mxu0 %v213_v23  ;;  %v3462_v42 = vadd.f32 %v3461_v41, %v3448_v38  ;;  %v122_v17 = vld [vmem:[#allocation2 + $0xd8] sm:$0xff]  ;;  %v218_v23 = vpack.c.bf16 %v169_v16, %v120_v15  ;;  %v6003_v41 = vld [vmem:[#allocation5 + $0x718] sm:$0xff] }
  0xd8   :  { %3718 = vmatpush.bf16.msra.mxu0 %v5975_v8  ;;  %3698 = vmatmul.bf16.vlgmr.msrb.gmra.mxu2 %v215_v24  ;;  %v6023_v8 = vld [vmem:[#allocation5 + $0x7b8] sm:$0xff]  ;;  %v220_v24 = vpack.c.bf16 %v171_v18, %v122_v17 }
  0xd9   :  { %3746 = vmatpush.bf16.msra.mxu2 %v5991_v9  ;;  %3684 = vmatmul.bf16.vlgmr.msrb.gmra.mxu1 %v214_v27  ;;  %v119_v9 = vld [vmem:[#allocation2 + $0xc0] sm:$0xff]  ;;  %v6047_v17 = vld [vmem:[#allocation5 + $0x878] sm:$0xff] }
  0xda   :  { %3732 = vmatpush.bf16.msra.mxu1 %v5983_v25  ;;  %3712 = vmatmul.bf16.vlgmr.msrb.gmra.mxu3 %v216_v28  ;;  %v6006_v25 = vld [vmem:[#allocation5 + $0x730] sm:$0xff]  ;;  %v6063_v18 = vld [vmem:[#allocation5 + $0x8f8] sm:$0xff] }
  0xdb   :  { %3760 = vmatpush.bf16.msra.mxu3 %v5999_v26  ;;  %v3475_v47 = vpop.f32.mrf.mxu2  ;;  %v6022_v26 = vld [vmem:[#allocation5 + $0x7b0] sm:$0xff] }
  0xdc   :  { %3719 = vmatpush.bf16.msra.mxu0 %v5974_v29  ;;  %v3476_v48 = vadd.f32 %v3475_v47, %v3462_v42  ;;  %v3449_v51 = vpop.f32.mrf.mxu0  ;;  %v6014_v27 = vld [vmem:[#allocation5 + $0x770] sm:$0xff]  ;;  %v6005_v29 = vld [vmem:[#allocation5 + $0x728] sm:$0xff]  ;;  %v6019_v42 = vld [vmem:[#allocation5 + $0x798] sm:$0xff] }
  0xdd   :  { %3747 = vmatpush.bf16.msra.mxu2 %v5990_v30  ;;  %v3489_v52 = vpop.f32.mrf.mxu3  ;;  %v3450_v53 = vadd.f32 %v3449_v51, %v3436_v19  ;;  %v217_v19 = vpack.c.bf16 %v168_v10, %v119_v9  ;;  %v6030_v28 = vld [vmem:[#allocation5 + $0x7f0] sm:$0xff]  ;;  %v6021_v30 = vld [vmem:[#allocation5 + $0x7a8] sm:$0xff]  ;;  %v6008_v9 = vld [vmem:[#allocation5 + $0x740] sm:$0xff] }
  0xde   :  { %3733 = vmatpush.bf16.msra.mxu1 %v5982_v31  ;;  %v6402_v54 = vadd.f32 %v3489_v52, %v3476_v48  ;;  %v3463_v57 = vpop.f32.mrf.mxu1  ;;  %v6013_v31 = vld [vmem:[#allocation5 + $0x768] sm:$0xff]  ;;  %v6002_v51 = vld [vmem:[#allocation5 + $0x710] sm:$0xff]  ;;  %v6024_v10 = vld [vmem:[#allocation5 + $0x7c0] sm:$0xff] }
  0xdf   :  { %3761 = vmatpush.bf16.msra.mxu3 %v5998_v32  ;;  %v3464_v58 = vadd.f32 %v3463_v57, %v3450_v53  ;;  %v6029_v32 = vld [vmem:[#allocation5 + $0x7e8] sm:$0xff]  ;;  %v6018_v52 = vld [vmem:[#allocation5 + $0x790] sm:$0xff] }
  0xe0   :  { %3720 = vmatpush.bf16.msra.mxu0 %v5973_v33  ;;  %v6001_v57 = vld [vmem:[#allocation5 + $0x708] sm:$0xff] }
  0xe1   :  { %3748 = vmatpush.bf16.msra.mxu2 %v5989_v34 }
  0xe2   :  { %3734 = vmatpush.bf16.msra.mxu1 %v5981_v35  ;;  %v6004_v35 = vld [vmem:[#allocation5 + $0x720] sm:$0xff] }
  0xe3   :  { %3762 = vmatpush.bf16.msra.mxu3 %v5997_v36  ;;  %v3477_v63 = vpop.f32.mrf.mxu2  ;;  %v6020_v36 = vld [vmem:[#allocation5 + $0x7a0] sm:$0xff] }
  0xe4   :  { %3721 = vmatpush.bf16.msra.mxu0 %v5972_v39  ;;  %v3478_v0 = vadd.f32 %v3477_v63, %v3464_v58  ;;  %v6012_v39 = vld [vmem:[#allocation5 + $0x760] sm:$0xff]  ;;  %v6017_v58 = vld [vmem:[#allocation5 + $0x788] sm:$0xff] }
  0xe5   :  { %3749 = vmatpush.bf16.msra.mxu2 %v5988_v40  ;;  %v3491_v3 = vpop.f32.mrf.mxu3  ;;  %v6028_v40 = vld [vmem:[#allocation5 + $0x7e0] sm:$0xff] }
  0xe6   :  { %3735 = vmatpush.bf16.msra.mxu1 %v5980_v43  ;;  %v6404_v6 = vadd.f32 %v3491_v3, %v3478_v0  ;;  %v6000_v0 = vld [vmem:[#allocation5 + $0x700] sm:$0xff]  ;;  %v6039_v3 = vld [vmem:[#allocation5 + $0x838] sm:$0xff] }
  0xe7   :  { %3763 = vmatpush.bf16.msra.mxu3 %v5996_v44 }
  0xe8   :  { %3722 = vmatpush.bf16.msra.mxu0 %v5971_v45  ;;  %v6011_v45 = vld [vmem:[#allocation5 + $0x758] sm:$0xff] }
  0xe9   :  { %3750 = vmatpush.bf16.msra.mxu2 %v5987_v46  ;;  %v6027_v46 = vld [vmem:[#allocation5 + $0x7d8] sm:$0xff] }
  0xea   :  { %3736 = vmatpush.bf16.msra.mxu1 %v5979_v49 }
  0xeb   :  { %3764 = vmatpush.bf16.msra.mxu3 %v5995_v50 }
  0xec   :  { %3723 = vmatpush.bf16.msra.mxu0 %v5970_v55  ;;  %v6010_v55 = vld [vmem:[#allocation5 + $0x750] sm:$0xff] }
  0xed   :  { %3751 = vmatpush.bf16.msra.mxu2 %v5986_v56  ;;  %v6026_v56 = vld [vmem:[#allocation5 + $0x7d0] sm:$0xff] }
  0xee   :  { %3737 = vmatpush.bf16.msra.mxu1 %v5978_v59 }
  0xef   :  { %3765 = vmatpush.bf16.msra.mxu3 %v5994_v60 }
  0xf0   :  { %3724 = vmatpush.bf16.msra.mxu0 %v5969_v61  ;;  %v6009_v61 = vld [vmem:[#allocation5 + $0x748] sm:$0xff] }
  0xf1   :  { %3752 = vmatpush.bf16.msra.mxu2 %v5985_v62  ;;  %v6025_v62 = vld [vmem:[#allocation5 + $0x7c8] sm:$0xff] }
  0xf2   :  { %3738 = vmatpush.bf16.msra.mxu1 %v5977_v1  ;;  %v6016_v1 = vld [vmem:[#allocation5 + $0x780] sm:$0xff] }
  0xf3   :  { %3766 = vmatpush.bf16.msra.mxu3 %v5993_v2 }
  0xf4   :  { %3725 = vmatpush.bf16.msra.mxu0 %v5968_v4  ;;  %v3503_v33 = vpop.f32.mrf.mxu0  ;;  %v6055_v4 = vld [vmem:[#allocation5 + $0x8b8] sm:$0xff] }
  0xf5   :  { %3753 = vmatpush.bf16.msra.mxu2 %v5984_v5  ;;  %v3504_v34 = vadd.f32 %v3503_v33, %v6402_v54  ;;  %v123_v5 = vld [vmem:[#allocation2 + $0xe0] sm:$0xff] }
  0xf6   :  { %3739 = vmatpush.bf16.msra.mxu1 %v5976_v13  ;;  %v3517_v37 = vpop.f32.mrf.mxu1  ;;  %v126_v13 = vld [vmem:[#allocation2 + $0xf8] sm:$0xff] }
  0xf7   :  { %3767 = vmatpush.bf16.msra.mxu3 %v5992_v14  ;;  %3726 = vmatmul.bf16.vlgmr.msra.gmra.mxu0 %v217_v19  ;;  %v3518_v38 = vadd.f32 %v3517_v37, %v3504_v34  ;;  %v175_v14 = vld [vmem:[#allocation2 + $0x280] sm:$0xff]  ;;  %v222_v19 = vpack.c.bf16 %v173_v12, %v124_v11  ;;  %v6035_v37 = vld [vmem:[#allocation5 + $0x818] sm:$0xff] }
  0xf8   :  { %3774 = vmatpush.bf16.msrb.mxu0 %v6007_v7  ;;  %3754 = vmatmul.bf16.vlgmr.msra.gmra.mxu2 %v219_v20  ;;  %v125_v7 = vld [vmem:[#allocation2 + $0xf0] sm:$0xff]  ;;  %v224_v20 = vpack.c.bf16 %v175_v14, %v126_v13  ;;  %v6079_v13 = vld [vmem:[#allocation5 + $0x978] sm:$0xff] }
  0xf9   :  { %3802 = vmatpush.bf16.msrb.mxu2 %v6023_v8  ;;  %3740 = vmatmul.bf16.vlgmr.msra.gmra.mxu1 %v218_v23  ;;  %v174_v8 = vld [vmem:[#allocation2 + $0x278] sm:$0xff]  ;;  %v6046_v23 = vld [vmem:[#allocation5 + $0x870] sm:$0xff]  ;;  %v6095_v14 = vld [vmem:[#allocation5 + $0x9f8] sm:$0xff] }
  0xfa   :  { %3788 = vmatpush.bf16.msrb.mxu1 %v6015_v21  ;;  %3768 = vmatmul.bf16.vlgmr.msra.gmra.mxu3 %v220_v24  ;;  %v223_v16 = vpack.c.bf16 %v174_v8, %v125_v7  ;;  %v6038_v21 = vld [vmem:[#allocation5 + $0x830] sm:$0xff]  ;;  %v128_v7 = vld [vmem:[#allocation2 + $0x108] sm:$0xff]  ;;  %v177_v8 = vld [vmem:[#allocation2 + $0x290] sm:$0xff] }
  0xfb   :  { %3816 = vmatpush.bf16.msrb.mxu3 %v6031_v22  ;;  %v3531_v43 = vpop.f32.mrf.mxu2  ;;  %v6054_v22 = vld [vmem:[#allocation5 + $0x8b0] sm:$0xff] }
  0xfc   :  { %3775 = vmatpush.bf16.msrb.mxu0 %v6006_v25  ;;  %v3532_v44 = vadd.f32 %v3531_v43, %v3518_v38  ;;  %v3505_v47 = vpop.f32.mrf.mxu0  ;;  %v6062_v24 = vld [vmem:[#allocation5 + $0x8f0] sm:$0xff]  ;;  %v6037_v25 = vld [vmem:[#allocation5 + $0x828] sm:$0xff]  ;;  %v6051_v38 = vld [vmem:[#allocation5 + $0x898] sm:$0xff] }
  0xfd   :  { %3803 = vmatpush.bf16.msrb.mxu2 %v6022_v26  ;;  %v3545_v48 = vpop.f32.mrf.mxu3  ;;  %v3506_v49 = vadd.f32 %v3505_v47, %v6404_v6  ;;  %v172_v6 = vld [vmem:[#allocation2 + $0x268] sm:$0xff]  ;;  %v6053_v26 = vld [vmem:[#allocation5 + $0x8a8] sm:$0xff]  ;;  %v6034_v47 = vld [vmem:[#allocation5 + $0x810] sm:$0xff] }
  0xfe   :  { %3789 = vmatpush.bf16.msrb.mxu1 %v6014_v27  ;;  %v6408_v50 = vadd.f32 %v3545_v48, %v3532_v44  ;;  %v3519_v53 = vpop.f32.mrf.mxu1  ;;  %v221_v15 = vpack.c.bf16 %v172_v6, %v123_v5  ;;  %v6045_v27 = vld [vmem:[#allocation5 + $0x868] sm:$0xff]  ;;  %v6050_v48 = vld [vmem:[#allocation5 + $0x890] sm:$0xff]  ;;  %v6040_v5 = vld [vmem:[#allocation5 + $0x840] sm:$0xff] }
  0xff   :  { %3817 = vmatpush.bf16.msrb.mxu3 %v6030_v28  ;;  %v3520_v54 = vadd.f32 %v3519_v53, %v3506_v49  ;;  %v6061_v28 = vld [vmem:[#allocation5 + $0x8e8] sm:$0xff]  ;;  %v6056_v6 = vld [vmem:[#allocation5 + $0x8c0] sm:$0xff] }
 0x100   :  { %3776 = vmatpush.bf16.msrb.mxu0 %v6005_v29  ;;  %v6033_v53 = vld [vmem:[#allocation5 + $0x808] sm:$0xff] }
 0x101   :  { %3804 = vmatpush.bf16.msrb.mxu2 %v6021_v30 }
 0x102   :  { %3790 = vmatpush.bf16.msrb.mxu1 %v6013_v31  ;;  %v6036_v31 = vld [vmem:[#allocation5 + $0x820] sm:$0xff] }
 0x103   :  { %3818 = vmatpush.bf16.msrb.mxu3 %v6029_v32  ;;  %v3533_v59 = vpop.f32.mrf.mxu2  ;;  %v6052_v32 = vld [vmem:[#allocation5 + $0x8a0] sm:$0xff] }
 0x104   :  { %3777 = vmatpush.bf16.msrb.mxu0 %v6004_v35  ;;  %v3534_v60 = vadd.f32 %v3533_v59, %v3520_v54  ;;  %v6044_v35 = vld [vmem:[#allocation5 + $0x860] sm:$0xff]  ;;  %v6049_v54 = vld [vmem:[#allocation5 + $0x888] sm:$0xff] }
 0x105   :  { %3805 = vmatpush.bf16.msrb.mxu2 %v6020_v36  ;;  %v3547_v63 = vpop.f32.mrf.mxu3  ;;  %v6060_v36 = vld [vmem:[#allocation5 + $0x8e0] sm:$0xff] }
 0x106   :  { %3791 = vmatpush.bf16.msrb.mxu1 %v6012_v39  ;;  %v6410_v2 = vadd.f32 %v3547_v63, %v3534_v60  ;;  %v6032_v60 = vld [vmem:[#allocation5 + $0x800] sm:$0xff]  ;;  %v6071_v63 = vld [vmem:[#allocation5 + $0x938] sm:$0xff] }
 0x107   :  { %3819 = vmatpush.bf16.msrb.mxu3 %v6028_v40 }
 0x108   :  { %3778 = vmatpush.bf16.msrb.mxu0 %v6003_v41  ;;  %v6043_v41 = vld [vmem:[#allocation5 + $0x858] sm:$0xff] }
 0x109   :  { %3806 = vmatpush.bf16.msrb.mxu2 %v6019_v42  ;;  %v6059_v42 = vld [vmem:[#allocation5 + $0x8d8] sm:$0xff] }
 0x10a   :  { %3792 = vmatpush.bf16.msrb.mxu1 %v6011_v45 }
 0x10b   :  { %3820 = vmatpush.bf16.msrb.mxu3 %v6027_v46 }
 0x10c   :  { %3779 = vmatpush.bf16.msrb.mxu0 %v6002_v51  ;;  %v6042_v51 = vld [vmem:[#allocation5 + $0x850] sm:$0xff] }
 0x10d   :  { %3807 = vmatpush.bf16.msrb.mxu2 %v6018_v52  ;;  %v6058_v52 = vld [vmem:[#allocation5 + $0x8d0] sm:$0xff] }
 0x10e   :  { %3793 = vmatpush.bf16.msrb.mxu1 %v6010_v55 }
 0x10f   :  { %3821 = vmatpush.bf16.msrb.mxu3 %v6026_v56 }
 0x110   :  { %3780 = vmatpush.bf16.msrb.mxu0 %v6001_v57  ;;  %v6041_v57 = vld [vmem:[#allocation5 + $0x848] sm:$0xff] }
 0x111   :  { %3808 = vmatpush.bf16.msrb.mxu2 %v6017_v58  ;;  %v6057_v58 = vld [vmem:[#allocation5 + $0x8c8] sm:$0xff] }
 0x112   :  { %3794 = vmatpush.bf16.msrb.mxu1 %v6009_v61  ;;  %v6048_v61 = vld [vmem:[#allocation5 + $0x880] sm:$0xff] }
 0x113   :  { %3822 = vmatpush.bf16.msrb.mxu3 %v6025_v62 }
 0x114   :  { %3781 = vmatpush.bf16.msrb.mxu0 %v6000_v0  ;;  %v3559_v29 = vpop.f32.mrf.mxu0  ;;  %v6087_v0 = vld [vmem:[#allocation5 + $0x9b8] sm:$0xff] }
 0x115   :  { %3809 = vmatpush.bf16.msrb.mxu2 %v6016_v1  ;;  %v3560_v30 = vadd.f32 %v3559_v29, %v6408_v50  ;;  %v127_v1 = vld [vmem:[#allocation2 + $0x100] sm:$0xff] }
 0x116   :  { %3795 = vmatpush.bf16.msrb.mxu1 %v6008_v9  ;;  %v3573_v33 = vpop.f32.mrf.mxu1  ;;  %v130_v9 = vld [vmem:[#allocation2 + $0x118] sm:$0xff] }
 0x117   :  { %3823 = vmatpush.bf16.msrb.mxu3 %v6024_v10  ;;  %3782 = vmatmul.bf16.vlgmr.msrb.gmra.mxu0 %v221_v15  ;;  %v3574_v34 = vadd.f32 %v3573_v33, %v3560_v30  ;;  %v179_v10 = vld [vmem:[#allocation2 + $0x2a0] sm:$0xff]  ;;  %v226_v15 = vpack.c.bf16 %v177_v8, %v128_v7  ;;  %v6067_v33 = vld [vmem:[#allocation5 + $0x918] sm:$0xff] }
 0x118   :  { %3830 = vmatpush.bf16.msra.mxu0 %v6039_v3  ;;  %3810 = vmatmul.bf16.vlgmr.msrb.gmra.mxu2 %v223_v16  ;;  %v129_v3 = vld [vmem:[#allocation2 + $0x110] sm:$0xff]  ;;  %v228_v16 = vpack.c.bf16 %v179_v10, %v130_v9  ;;  %v6102_v7 = vld [vmem:[#allocation5 + $0xa30] sm:$0xff] }
 0x119   :  { %3858 = vmatpush.bf16.msra.mxu2 %v6055_v4  ;;  %3796 = vmatmul.bf16.vlgmr.msrb.gmra.mxu1 %v222_v19  ;;  %v178_v4 = vld [vmem:[#allocation2 + $0x298] sm:$0xff]  ;;  %v6078_v19 = vld [vmem:[#allocation5 + $0x970] sm:$0xff] }
 0x11a   :  { %3844 = vmatpush.bf16.msra.mxu1 %v6047_v17  ;;  %3824 = vmatmul.bf16.vlgmr.msrb.gmra.mxu3 %v224_v20  ;;  %v227_v12 = vpack.c.bf16 %v178_v4, %v129_v3  ;;  %v6070_v17 = vld [vmem:[#allocation5 + $0x930] sm:$0xff]  ;;  %v6111_v3 = vld [vmem:[#allocation5 + $0xa78] sm:$0xff] }
 0x11b   :  { %3872 = vmatpush.bf16.msra.mxu3 %v6063_v18  ;;  %v3587_v39 = vpop.f32.mrf.mxu2  ;;  %v6086_v18 = vld [vmem:[#allocation5 + $0x9b0] sm:$0xff]  ;;  %v6127_v4 = vld [vmem:[#allocation5 + $0xaf8] sm:$0xff] }
 0x11c   :  { %3831 = vmatpush.bf16.msra.mxu0 %v6038_v21  ;;  %v3588_v40 = vadd.f32 %v3587_v39, %v3574_v34  ;;  %v3561_v43 = vpop.f32.mrf.mxu0  ;;  %v6094_v20 = vld [vmem:[#allocation5 + $0x9f0] sm:$0xff]  ;;  %v6069_v21 = vld [vmem:[#allocation5 + $0x928] sm:$0xff]  ;;  %v6083_v34 = vld [vmem:[#allocation5 + $0x998] sm:$0xff] }
 0x11d   :  { %3859 = vmatpush.bf16.msra.mxu2 %v6054_v22  ;;  %v3601_v44 = vpop.f32.mrf.mxu3  ;;  %v3562_v45 = vadd.f32 %v3561_v43, %v6410_v2  ;;  %v176_v2 = vld [vmem:[#allocation2 + $0x288] sm:$0xff]  ;;  %v6085_v22 = vld [vmem:[#allocation5 + $0x9a8] sm:$0xff]  ;;  %v6066_v43 = vld [vmem:[#allocation5 + $0x910] sm:$0xff] }
 0x11e   :  { %3845 = vmatpush.bf16.msra.mxu1 %v6046_v23  ;;  %v6414_v46 = vadd.f32 %v3601_v44, %v3588_v40  ;;  %v3575_v49 = vpop.f32.mrf.mxu1  ;;  %v225_v11 = vpack.c.bf16 %v176_v2, %v127_v1  ;;  %v6077_v23 = vld [vmem:[#allocation5 + $0x968] sm:$0xff]  ;;  %v6082_v44 = vld [vmem:[#allocation5 + $0x990] sm:$0xff] }
 0x11f   :  { %3873 = vmatpush.bf16.msra.mxu3 %v6062_v24  ;;  %v3576_v50 = vadd.f32 %v3575_v49, %v3562_v45  ;;  %v6093_v24 = vld [vmem:[#allocation5 + $0x9e8] sm:$0xff]  ;;  %v6074_v45 = vld [vmem:[#allocation5 + $0x950] sm:$0xff] }
 0x120   :  { %3832 = vmatpush.bf16.msra.mxu0 %v6037_v25  ;;  %v6073_v49 = vld [vmem:[#allocation5 + $0x948] sm:$0xff]  ;;  %v6118_v8 = vld [vmem:[#allocation5 + $0xab0] sm:$0xff] }
 0x121   :  { %3860 = vmatpush.bf16.msra.mxu2 %v6053_v26  ;;  %v6110_v9 = vld [vmem:[#allocation5 + $0xa70] sm:$0xff] }
 0x122   :  { %3846 = vmatpush.bf16.msra.mxu1 %v6045_v27  ;;  %v6068_v27 = vld [vmem:[#allocation5 + $0x920] sm:$0xff]  ;;  %v6126_v10 = vld [vmem:[#allocation5 + $0xaf0] sm:$0xff] }
 0x123   :  { %3874 = vmatpush.bf16.msra.mxu3 %v6061_v28  ;;  %v3589_v55 = vpop.f32.mrf.mxu2  ;;  %v6084_v28 = vld [vmem:[#allocation5 + $0x9a0] sm:$0xff] }
 0x124   :  { %3833 = vmatpush.bf16.msra.mxu0 %v6036_v31  ;;  %v3590_v56 = vadd.f32 %v3589_v55, %v3576_v50  ;;  %v6076_v31 = vld [vmem:[#allocation5 + $0x960] sm:$0xff]  ;;  %v6089_v50 = vld [vmem:[#allocation5 + $0x9c8] sm:$0xff]  ;;  %v131_v55 = vld [vmem:[#allocation2 + $0x120] sm:$0xff] }
 0x125   :  { %3861 = vmatpush.bf16.msra.mxu2 %v6052_v32  ;;  %v3603_v59 = vpop.f32.mrf.mxu3  ;;  %v6092_v32 = vld [vmem:[#allocation5 + $0x9e0] sm:$0xff] }
 0x126   :  { %3847 = vmatpush.bf16.msra.mxu1 %v6044_v35  ;;  %v6416_v62 = vadd.f32 %v3603_v59, %v3590_v56  ;;  %v180_v56 = vld [vmem:[#allocation2 + $0x2a8] sm:$0xff]  ;;  %v6072_v59 = vld [vmem:[#allocation5 + $0x940] sm:$0xff] }
 0x127   :  { %3875 = vmatpush.bf16.msra.mxu3 %v6060_v36  ;;  %v229_v1 = vpack.c.bf16 %v180_v56, %v131_v55  ;;  %v6150_v55 = vld [vmem:[#allocation5 + $0xbb0] sm:$0xff] }
 0x128   :  { %3834 = vmatpush.bf16.msra.mxu0 %v6035_v37  ;;  %v6075_v37 = vld [vmem:[#allocation5 + $0x958] sm:$0xff]  ;;  %v6142_v56 = vld [vmem:[#allocation5 + $0xb70] sm:$0xff] }
 0x129   :  { %3862 = vmatpush.bf16.msra.mxu2 %v6051_v38  ;;  %v6091_v38 = vld [vmem:[#allocation5 + $0x9d8] sm:$0xff] }
 0x12a   :  { %3848 = vmatpush.bf16.msra.mxu1 %v6043_v41 }
 0x12b   :  { %3876 = vmatpush.bf16.msra.mxu3 %v6059_v42 }
 0x12c   :  { %3835 = vmatpush.bf16.msra.mxu0 %v6034_v47  ;;  %v6065_v47 = vld [vmem:[#allocation5 + $0x908] sm:$0xff] }
 0x12d   :  { %3863 = vmatpush.bf16.msra.mxu2 %v6050_v48  ;;  %v6081_v48 = vld [vmem:[#allocation5 + $0x988] sm:$0xff] }
 0x12e   :  { %3849 = vmatpush.bf16.msra.mxu1 %v6042_v51  ;;  %v6064_v51 = vld [vmem:[#allocation5 + $0x900] sm:$0xff] }
 0x12f   :  { %3877 = vmatpush.bf16.msra.mxu3 %v6058_v52  ;;  %v6080_v52 = vld [vmem:[#allocation5 + $0x980] sm:$0xff] }
 0x130   :  { %3836 = vmatpush.bf16.msra.mxu0 %v6033_v53  ;;  %v6103_v53 = vld [vmem:[#allocation5 + $0xa38] sm:$0xff] }
 0x131   :  { %3864 = vmatpush.bf16.msra.mxu2 %v6049_v54  ;;  %v6119_v54 = vld [vmem:[#allocation5 + $0xab8] sm:$0xff] }
 0x132   :  { %3850 = vmatpush.bf16.msra.mxu1 %v6041_v57  ;;  %v133_v57 = vld [vmem:[#allocation2 + $0x130] sm:$0xff] }
 0x133   :  { %3878 = vmatpush.bf16.msra.mxu3 %v6057_v58  ;;  %v182_v58 = vld [vmem:[#allocation2 + $0x2b8] sm:$0xff] }
 0x134   :  { %3837 = vmatpush.bf16.msra.mxu0 %v6032_v60  ;;  %v3615_v25 = vpop.f32.mrf.mxu0  ;;  %v6088_v60 = vld [vmem:[#allocation5 + $0x9c0] sm:$0xff]  ;;  %v231_v2 = vpack.c.bf16 %v182_v58, %v133_v57  ;;  %v6158_v57 = vld [vmem:[#allocation5 + $0xbf0] sm:$0xff]  ;;  %v6133_v58 = vld [vmem:[#allocation5 + $0xb28] sm:$0xff] }
 0x135   :  { %3865 = vmatpush.bf16.msra.mxu2 %v6048_v61  ;;  %v3616_v26 = vadd.f32 %v3615_v25, %v6414_v46  ;;  %v6090_v46 = vld [vmem:[#allocation5 + $0x9d0] sm:$0xff]  ;;  %v132_v61 = vld [vmem:[#allocation2 + $0x128] sm:$0xff] }
 0x136   :  { %3851 = vmatpush.bf16.msra.mxu1 %v6040_v5  ;;  %v3629_v29 = vpop.f32.mrf.mxu1  ;;  %v6098_v25 = vld [vmem:[#allocation5 + $0xa10] sm:$0xff] }
 0x137   :  { %3879 = vmatpush.bf16.msra.mxu3 %v6056_v6  ;;  %3838 = vmatmul.bf16.vlgmr.msra.gmra.mxu0 %v225_v11  ;;  %v3630_v30 = vadd.f32 %v3629_v29, %v3616_v26  ;;  %v6101_v11 = vld [vmem:[#allocation5 + $0xa28] sm:$0xff]  ;;  %v6114_v26 = vld [vmem:[#allocation5 + $0xa90] sm:$0xff] }
 0x138   :  { %3886 = vmatpush.bf16.msrb.mxu0 %v6071_v63  ;;  %3866 = vmatmul.bf16.vlgmr.msra.gmra.mxu2 %v227_v12  ;;  %v134_v63 = vld [vmem:[#allocation2 + $0x138] sm:$0xff] }
 0x139   :  { %3914 = vmatpush.bf16.msrb.mxu2 %v6087_v0  ;;  %3852 = vmatmul.bf16.vlgmr.msra.gmra.mxu1 %v226_v15  ;;  %v183_v0 = vld [vmem:[#allocation2 + $0x2c0] sm:$0xff]  ;;  %v6117_v12 = vld [vmem:[#allocation5 + $0xaa8] sm:$0xff] }
 0x13a   :  { %3900 = vmatpush.bf16.msrb.mxu1 %v6079_v13  ;;  %3880 = vmatmul.bf16.vlgmr.msra.gmra.mxu3 %v228_v16  ;;  %v232_v6 = vpack.c.bf16 %v183_v0, %v134_v63  ;;  %v6109_v13 = vld [vmem:[#allocation5 + $0xa68] sm:$0xff]  ;;  %v6148_v63 = vld [vmem:[#allocation5 + $0xba0] sm:$0xff] }
 0x13b   :  { %3928 = vmatpush.bf16.msrb.mxu3 %v6095_v14  ;;  %v3643_v35 = vpop.f32.mrf.mxu2  ;;  %v6125_v14 = vld [vmem:[#allocation5 + $0xae8] sm:$0xff]  ;;  %v6140_v0 = vld [vmem:[#allocation5 + $0xb60] sm:$0xff] }
 0x13c   :  { %3887 = vmatpush.bf16.msrb.mxu0 %v6070_v17  ;;  %v3644_v36 = vadd.f32 %v3643_v35, %v3630_v30  ;;  %v3617_v39 = vpop.f32.mrf.mxu0  ;;  %v6100_v17 = vld [vmem:[#allocation5 + $0xa20] sm:$0xff]  ;;  %v6097_v29 = vld [vmem:[#allocation5 + $0xa08] sm:$0xff]  ;;  %v6135_v35 = vld [vmem:[#allocation5 + $0xb38] sm:$0xff] }
 0x13d   :  { %3915 = vmatpush.bf16.msrb.mxu2 %v6086_v18  ;;  %v3657_v40 = vpop.f32.mrf.mxu3  ;;  %v6420_v41 = vadd.f32 %v3617_v39, %v6416_v62  ;;  %v181_v62 = vld [vmem:[#allocation2 + $0x2b0] sm:$0xff]  ;;  %v6113_v30 = vld [vmem:[#allocation5 + $0xa88] sm:$0xff] }
 0x13e   :  { %3901 = vmatpush.bf16.msrb.mxu1 %v6078_v19  ;;  %v6422_v42 = vadd.f32 %v3657_v40, %v3644_v36  ;;  %v230_v5 = vpack.c.bf16 %v181_v62, %v132_v61  ;;  %v6116_v18 = vld [vmem:[#allocation5 + $0xaa0] sm:$0xff]  ;;  %v6151_v36 = vld [vmem:[#allocation5 + $0xbb8] sm:$0xff]  ;;  %v186_v40 = vld [vmem:[#allocation2 + $0x2d8] sm:$0xff] }
 0x13f   :  { %3929 = vmatpush.bf16.msrb.mxu3 %v6094_v20  ;;  %v6108_v19 = vld [vmem:[#allocation5 + $0xa60] sm:$0xff]  ;;  %v6157_v61 = vld [vmem:[#allocation5 + $0xbe8] sm:$0xff] }
 0x140   :  { %3888 = vmatpush.bf16.msrb.mxu0 %v6069_v21  ;;  %v6124_v20 = vld [vmem:[#allocation5 + $0xae0] sm:$0xff]  ;;  %v6099_v21 = vld [vmem:[#allocation5 + $0xa18] sm:$0xff] }
 0x141   :  { %3916 = vmatpush.bf16.msrb.mxu2 %v6085_v22  ;;  %v6115_v22 = vld [vmem:[#allocation5 + $0xa98] sm:$0xff]  ;;  %v137_v39 = vld [vmem:[#allocation2 + $0x150] sm:$0xff] }
 0x142   :  { %3902 = vmatpush.bf16.msrb.mxu1 %v6077_v23  ;;  %v6107_v23 = vld [vmem:[#allocation5 + $0xa58] sm:$0xff]  ;;  %v6132_v62 = vld [vmem:[#allocation5 + $0xb20] sm:$0xff] }
 0x143   :  { %3930 = vmatpush.bf16.msrb.mxu3 %v6093_v24  ;;  %v6123_v24 = vld [vmem:[#allocation5 + $0xad8] sm:$0xff] }
 0x144   :  { %3889 = vmatpush.bf16.msrb.mxu0 %v6068_v27  ;;  %v6106_v27 = vld [vmem:[#allocation5 + $0xa50] sm:$0xff] }
 0x145   :  { %3917 = vmatpush.bf16.msrb.mxu2 %v6084_v28  ;;  %v6122_v28 = vld [vmem:[#allocation5 + $0xad0] sm:$0xff] }
 0x146   :  { %3903 = vmatpush.bf16.msrb.mxu1 %v6076_v31  ;;  %v6105_v31 = vld [vmem:[#allocation5 + $0xa48] sm:$0xff] }
 0x147   :  { %3931 = vmatpush.bf16.msrb.mxu3 %v6092_v32  ;;  %v6121_v32 = vld [vmem:[#allocation5 + $0xac8] sm:$0xff] }
 0x148   :  { %3890 = vmatpush.bf16.msrb.mxu0 %v6067_v33  ;;  %v6096_v33 = vld [vmem:[#allocation5 + $0xa00] sm:$0xff] }
 0x149   :  { %3918 = vmatpush.bf16.msrb.mxu2 %v6083_v34  ;;  %v6112_v34 = vld [vmem:[#allocation5 + $0xa80] sm:$0xff] }
 0x14a   :  { %3904 = vmatpush.bf16.msrb.mxu1 %v6075_v37  ;;  %v135_v37 = vld [vmem:[#allocation2 + $0x140] sm:$0xff] }
 0x14b   :  { %3932 = vmatpush.bf16.msrb.mxu3 %v6091_v38  ;;  %v184_v38 = vld [vmem:[#allocation2 + $0x2c8] sm:$0xff] }
 0x14c   :  { %3891 = vmatpush.bf16.msrb.mxu0 %v6066_v43  ;;  %v6120_v43 = vld [vmem:[#allocation5 + $0xac0] sm:$0xff] }
 0x14d   :  { %3919 = vmatpush.bf16.msrb.mxu2 %v6082_v44  ;;  %v136_v44 = vld [vmem:[#allocation2 + $0x148] sm:$0xff] }
 0x14e   :  { %3905 = vmatpush.bf16.msrb.mxu1 %v6074_v45  ;;  %v185_v45 = vld [vmem:[#allocation2 + $0x2d0] sm:$0xff] }
 0x14f   :  { %3933 = vmatpush.bf16.msrb.mxu3 %v6090_v46  ;;  %v138_v46 = vld [vmem:[#allocation2 + $0x158] sm:$0xff] }
 0x150   :  { %3892 = vmatpush.bf16.msrb.mxu0 %v6065_v47  ;;  %v187_v47 = vld [vmem:[#allocation2 + $0x2e0] sm:$0xff] }
 0x151   :  { %3920 = vmatpush.bf16.msrb.mxu2 %v6081_v48  ;;  %v233_v48 = vpack.c.bf16 %v184_v38, %v135_v37  ;;  %v6161_v37 = vld [vmem:[#allocation5 + $0xc08] sm:$0xff]  ;;  %v6160_v38 = vld [vmem:[#allocation5 + $0xc00] sm:$0xff] }
 0x152   :  { %3906 = vmatpush.bf16.msrb.mxu1 %v6073_v49  ;;  %v235_v49 = vpack.c.bf16 %v186_v40, %v137_v39  ;;  %v143_v39 = vld [vmem:[#allocation2 + $0x180] sm:$0xff]  ;;  %v192_v40 = vld [vmem:[#allocation2 + $0x308] sm:$0xff] }
 0x153   :  { %3934 = vmatpush.bf16.msrb.mxu3 %v6089_v50  ;;  %v6143_v50 = vld [vmem:[#allocation5 + $0xb78] sm:$0xff] }
 0x154   :  { %3893 = vmatpush.bf16.msrb.mxu0 %v6064_v51  ;;  %v3671_v15 = vpop.f32.mrf.mxu0  ;;  %v6159_v51 = vld [vmem:[#allocation5 + $0xbf8] sm:$0xff] }
 0x155   :  { %3921 = vmatpush.bf16.msrb.mxu2 %v6080_v52  ;;  %v6425_v16 = vadd.f32 %v3671_v15, %v6422_v42  ;;  %v6104_v42 = vld [vmem:[#allocation5 + $0xa40] sm:$0xff]  ;;  %v234_v52 = vpack.c.bf16 %v185_v45, %v136_v44  ;;  %v3645_v44 = vpop.f32.mrf.mxu2  ;;  %v3659_v45 = vpop.f32.mrf.mxu3 }
 0x156   :  { %3907 = vmatpush.bf16.msrb.mxu1 %v6072_v59  ;;  %v6149_v59 = vld [vmem:[#allocation5 + $0xba8] sm:$0xff]  ;;  %v6144_v15 = vld [vmem:[#allocation5 + $0xb80] sm:$0xff] }
 0x157   :  { %3935 = vmatpush.bf16.msrb.mxu3 %v6088_v60  ;;  %3894 = vmatmul.bf16.vlgmr.msrb.gmra.mxu0 %v229_v1  ;;  %v6141_v60 = vld [vmem:[#allocation5 + $0xb68] sm:$0xff]  ;;  %v6156_v1 = vld [vmem:[#allocation5 + $0xbe0] sm:$0xff] }
 0x158   :  { %3942 = vmatpush.bf16.msra.mxu0 %v6103_v53  ;;  %3922 = vmatmul.bf16.vlgmr.msrb.gmra.mxu2 %v231_v2  ;;  %v236_v53 = vpack.c.bf16 %v187_v47, %v138_v46  ;;  %v6131_v2 = vld [vmem:[#allocation5 + $0xb18] sm:$0xff] }
 0x159   :  { %3970 = vmatpush.bf16.msra.mxu2 %v6119_v54  ;;  %3908 = vmatmul.bf16.vlgmr.msrb.gmra.mxu1 %v230_v5  ;;  %v6134_v54 = vld [vmem:[#allocation5 + $0xb30] sm:$0xff]  ;;  %v6155_v5 = vld [vmem:[#allocation5 + $0xbd8] sm:$0xff] }
 0x15a   :  { %3956 = vmatpush.bf16.msra.mxu1 %v6111_v3  ;;  %3936 = vmatmul.bf16.vlgmr.msrb.gmra.mxu3 %v232_v6  ;;  %v6147_v3 = vld [vmem:[#allocation5 + $0xb98] sm:$0xff]  ;;  %v6130_v6 = vld [vmem:[#allocation5 + $0xb10] sm:$0xff] }
 0x15b   :  { %3984 = vmatpush.bf16.msra.mxu3 %v6127_v4  ;;  %v6139_v4 = vld [vmem:[#allocation5 + $0xb58] sm:$0xff] }
 0x15c   :  { %3943 = vmatpush.bf16.msra.mxu0 %v6102_v7  ;;  %v6146_v7 = vld [vmem:[#allocation5 + $0xb90] sm:$0xff] }
 0x15d   :  { %3971 = vmatpush.bf16.msra.mxu2 %v6118_v8  ;;  %v6138_v8 = vld [vmem:[#allocation5 + $0xb50] sm:$0xff]  ;;  %v3699_v47 = vpop.f32.mrf.mxu2 }
 0x15e   :  { %3957 = vmatpush.bf16.msra.mxu1 %v6110_v9  ;;  %v6154_v9 = vld [vmem:[#allocation5 + $0xbd0] sm:$0xff] }
 0x15f   :  { %3985 = vmatpush.bf16.msra.mxu3 %v6126_v10  ;;  %v6129_v10 = vld [vmem:[#allocation5 + $0xb08] sm:$0xff] }
 0x160   :  { %3944 = vmatpush.bf16.msra.mxu0 %v6101_v11  ;;  %v6145_v11 = vld [vmem:[#allocation5 + $0xb88] sm:$0xff] }
 0x161   :  { %3972 = vmatpush.bf16.msra.mxu2 %v6117_v12  ;;  %v6137_v12 = vld [vmem:[#allocation5 + $0xb48] sm:$0xff] }
 0x162   :  { %3958 = vmatpush.bf16.msra.mxu1 %v6109_v13  ;;  %v6153_v13 = vld [vmem:[#allocation5 + $0xbc8] sm:$0xff] }
 0x163   :  { %3986 = vmatpush.bf16.msra.mxu3 %v6125_v14  ;;  %v6128_v14 = vld [vmem:[#allocation5 + $0xb00] sm:$0xff] }
 0x164   :  { %3945 = vmatpush.bf16.msra.mxu0 %v6100_v17  ;;  %v6167_v17 = vld [vmem:[#allocation5 + $0xc38] sm:$0xff] }
 0x165   :  { %3973 = vmatpush.bf16.msra.mxu2 %v6116_v18  ;;  %v139_v18 = vld [vmem:[#allocation2 + $0x160] sm:$0xff] }
 0x166   :  { %3959 = vmatpush.bf16.msra.mxu1 %v6108_v19  ;;  %v188_v19 = vld [vmem:[#allocation2 + $0x2e8] sm:$0xff] }
 0x167   :  { %3987 = vmatpush.bf16.msra.mxu3 %v6124_v20  ;;  %v141_v20 = vld [vmem:[#allocation2 + $0x170] sm:$0xff] }
 0x168   :  { %3946 = vmatpush.bf16.msra.mxu0 %v6099_v21  ;;  %v190_v21 = vld [vmem:[#allocation2 + $0x2f8] sm:$0xff] }
 0x169   :  { %3974 = vmatpush.bf16.msra.mxu2 %v6115_v22  ;;  %v6136_v22 = vld [vmem:[#allocation5 + $0xb40] sm:$0xff] }
 0x16a   :  { %3960 = vmatpush.bf16.msra.mxu1 %v6107_v23  ;;  %v6152_v23 = vld [vmem:[#allocation5 + $0xbc0] sm:$0xff] }
 0x16b   :  { %3988 = vmatpush.bf16.msra.mxu3 %v6123_v24  ;;  %v140_v24 = vld [vmem:[#allocation2 + $0x168] sm:$0xff] }
 0x16c   :  { %3947 = vmatpush.bf16.msra.mxu0 %v6098_v25  ;;  %v189_v25 = vld [vmem:[#allocation2 + $0x2f0] sm:$0xff] }
 0x16d   :  { %3975 = vmatpush.bf16.msra.mxu2 %v6114_v26  ;;  %v142_v26 = vld [vmem:[#allocation2 + $0x178] sm:$0xff] }
 0x16e   :  { %3961 = vmatpush.bf16.msra.mxu1 %v6106_v27  ;;  %v191_v27 = vld [vmem:[#allocation2 + $0x300] sm:$0xff] }
 0x16f   :  { %3989 = vmatpush.bf16.msra.mxu3 %v6122_v28  ;;  %v237_v28 = vpack.c.bf16 %v188_v19, %v139_v18 }
 0x170   :  { %3948 = vmatpush.bf16.msra.mxu0 %v6097_v29  ;;  %v239_v29 = vpack.c.bf16 %v190_v21, %v141_v20 }
 0x171   :  { %3976 = vmatpush.bf16.msra.mxu2 %v6113_v30  ;;  %v238_v30 = vpack.c.bf16 %v189_v25, %v140_v24 }
 0x172   :  { %3962 = vmatpush.bf16.msra.mxu1 %v6105_v31  ;;  %v240_v31 = vpack.c.bf16 %v191_v27, %v142_v26 }
 0x173   :  { %3990 = vmatpush.bf16.msra.mxu3 %v6121_v32  ;;  %v6166_v32 = vld [vmem:[#allocation5 + $0xc30] sm:$0xff] }
 0x174   :  { %3949 = vmatpush.bf16.msra.mxu0 %v6096_v33  ;;  %v6165_v33 = vld [vmem:[#allocation5 + $0xc28] sm:$0xff] }
 0x175   :  { %3977 = vmatpush.bf16.msra.mxu2 %v6112_v34  ;;  %v6164_v34 = vld [vmem:[#allocation5 + $0xc20] sm:$0xff] }
 0x176   :  { %3963 = vmatpush.bf16.msra.mxu1 %v6104_v42  ;;  %v241_v42 = vpack.c.bf16 %v192_v40, %v143_v39  ;;  %v6174_v39 = vld [vmem:[#allocation8 + $0x30] sm:$0xff] }
 0x177   :  { %3991 = vmatpush.bf16.msra.mxu3 %v6120_v43  ;;  %3950 = vmatmul.bf16.vlgmr.msra.gmra.mxu0 %v233_v48  ;;  %v3631_v43 = vpop.f32.mrf.mxu1  ;;  %v3673_v48 = vpop.f32.mrf.mxu0 }
 0x178   :  { %3998 = vmatpush.bf16.msrb.mxu0 %v6135_v35  ;;  %3978 = vmatmul.bf16.vlgmr.msra.gmra.mxu2 %v235_v49  ;;  %v6163_v35 = vld [vmem:[#allocation5 + $0xc18] sm:$0xff]  ;;  %v3713_v49 = vpop.f32.mrf.mxu3 }
 0x179   :  { %4026 = vmatpush.bf16.msrb.mxu2 %v6151_v36  ;;  %3964 = vmatmul.bf16.vlgmr.msra.gmra.mxu1 %v234_v52  ;;  %v6162_v36 = vld [vmem:[#allocation5 + $0xc10] sm:$0xff] }
 0x17a   :  { %4012 = vmatpush.bf16.msrb.mxu1 %v6143_v50  ;;  %3992 = vmatmul.bf16.vlgmr.msra.gmra.mxu3 %v236_v53 }
 0x17b   :  { %4040 = vmatpush.bf16.msrb.mxu3 %v6159_v51  ;;  %v3701_v51 = vpop.f32.mrf.mxu2 }
 0x17c   :  { %3999 = vmatpush.bf16.msrb.mxu0 %v6134_v54 }
 0x17d   :  { %4027 = vmatpush.bf16.msrb.mxu2 %v6150_v55 }
 0x17e   :  { %4013 = vmatpush.bf16.msrb.mxu1 %v6142_v56 }
 0x17f   :  { %4041 = vmatpush.bf16.msrb.mxu3 %v6158_v57  ;;  %v3685_v46 = vpop.f32.mrf.mxu1  ;;  %v3727_v52 = vpop.f32.mrf.mxu0 }
 0x180   :  { %4000 = vmatpush.bf16.msrb.mxu0 %v6133_v58  ;;  %v3715_v53 = vpop.f32.mrf.mxu3 }
 0x181   :  { %4028 = vmatpush.bf16.msrb.mxu2 %v6149_v59 }
 0x182   :  { %4014 = vmatpush.bf16.msrb.mxu1 %v6141_v60 }
 0x183   :  { %4042 = vmatpush.bf16.msrb.mxu3 %v6157_v61  ;;  %v3755_v55 = vpop.f32.mrf.mxu2 }
 0x184   :  { %4001 = vmatpush.bf16.msrb.mxu0 %v6132_v62 }
 0x185   :  { %4029 = vmatpush.bf16.msrb.mxu2 %v6148_v63  ;;  %v3632_v63 = vadd.f32 %v3631_v43, %v6420_v41  ;;  %v6173_v43 = vld [vmem:[#allocation8 + $0x28] sm:$0xff] }
 0x186   :  { %4015 = vmatpush.bf16.msrb.mxu1 %v6140_v0 }
 0x187   :  { %4043 = vmatpush.bf16.msrb.mxu3 %v6156_v1  ;;  %v3687_v50 = vpop.f32.mrf.mxu1  ;;  %v3729_v56 = vpop.f32.mrf.mxu0  ;;  %v3646_v1 = vadd.f32 %v3645_v44, %v3632_v63 }
 0x188   :  { %4002 = vmatpush.bf16.msrb.mxu0 %v6131_v2  ;;  %v3769_v57 = vpop.f32.mrf.mxu3 }
 0x189   :  { %4030 = vmatpush.bf16.msrb.mxu2 %v6147_v3 }
 0x18a   :  { %4016 = vmatpush.bf16.msrb.mxu1 %v6139_v4  ;;  %v3660_v4 = vadd.f32 %v3659_v45, %v3646_v1 }
 0x18b   :  { %4044 = vmatpush.bf16.msrb.mxu3 %v6155_v5  ;;  %v3757_v59 = vpop.f32.mrf.mxu2 }
 0x18c   :  { %4003 = vmatpush.bf16.msrb.mxu0 %v6130_v6  ;;  %v3674_v5 = vadd.f32 %v3673_v48, %v3660_v4  ;;  %v6172_v48 = vld [vmem:[#allocation8 + $0x20] sm:$0xff] }
 0x18d   :  { %4031 = vmatpush.bf16.msrb.mxu2 %v6146_v7  ;;  %v3686_v7 = vadd.f32 %v3685_v46, %v6425_v16 }
 0x18e   :  { %4017 = vmatpush.bf16.msrb.mxu1 %v6138_v8 }
 0x18f   :  { %4045 = vmatpush.bf16.msrb.mxu3 %v6154_v9  ;;  %v3741_v54 = vpop.f32.mrf.mxu1 }
 0x190   :  { %4004 = vmatpush.bf16.msrb.mxu0 %v6129_v10  ;;  %v3771_v61 = vpop.f32.mrf.mxu3  ;;  %v3700_v10 = vadd.f32 %v3699_v47, %v3686_v7 }
 0x191   :  { %4032 = vmatpush.bf16.msrb.mxu2 %v6145_v11  ;;  %v3688_v11 = vadd.f32 %v3687_v50, %v3674_v5 }
 0x192   :  { %4018 = vmatpush.bf16.msrb.mxu1 %v6137_v12 }
 0x193   :  { %4046 = vmatpush.bf16.msrb.mxu3 %v6153_v13  ;;  %v3702_v12 = vadd.f32 %v3701_v51, %v3688_v11 }
 0x194   :  { %4005 = vmatpush.bf16.msrb.mxu0 %v6128_v14  ;;  %v3783_v60 = vpop.f32.mrf.mxu0  ;;  %v3714_v14 = vadd.f32 %v3713_v49, %v3700_v10 }
 0x195   :  { %4033 = vmatpush.bf16.msrb.mxu2 %v6144_v15 }
 0x196   :  { %4019 = vmatpush.bf16.msrb.mxu1 %v6136_v22  ;;  %v3728_v18 = vadd.f32 %v3727_v52, %v3714_v14 }
 0x197   :  { %4047 = vmatpush.bf16.msrb.mxu3 %v6152_v23  ;;  %4006 = vmatmul.bf16.vlgmr.msrb.gmra.mxu0 %v237_v28  ;;  %v3743_v58 = vpop.f32.mrf.mxu1 }
 0x198   :  { %4054 = vmatpush.bf16.msra.mxu0 %v6167_v17  ;;  %4034 = vmatmul.bf16.vlgmr.msrb.gmra.mxu2 %v239_v29  ;;  %v3716_v17 = vadd.f32 %v3715_v53, %v3702_v12  ;;  %v3742_v21 = vadd.f32 %v3741_v54, %v3728_v18 }
 0x199   :  { %4020 = vmatmul.bf16.vlgmr.msrb.gmra.mxu1 %v238_v30 }
 0x19a   :  { %4048 = vmatmul.bf16.vlgmr.msrb.gmra.mxu3 %v240_v31  ;;  %v3730_v19 = vadd.f32 %v3729_v56, %v3716_v17  ;;  %v3756_v23 = vadd.f32 %v3755_v55, %v3742_v21  ;;  %v6171_v56 = vld [vmem:[#allocation8 + $0x18] sm:$0xff] }
 0x19b   :  { %v3811_v0 = vpop.f32.mrf.mxu2 }
 0x19c   :  { %4055 = vmatpush.bf16.msra.mxu0 %v6166_v32  ;;  %v3785_v2 = vpop.f32.mrf.mxu0  ;;  %v3744_v24 = vadd.f32 %v3743_v58, %v3730_v19  ;;  %v3770_v16 = vadd.f32 %v3769_v57, %v3756_v23  ;;  %v6175_v32 = vld [vmem:[#allocation8 + $0x38] sm:$0xff] }
 0x19d   :  { %v3825_v3 = vpop.f32.mrf.mxu3  ;;  %4139 = vmatpush.bf16.msra.mxu1 %v6175_v32 }
 0x19e   :  { %v3758_v25 = vadd.f32 %v3757_v59, %v3744_v24  ;;  %v3784_v30 = vadd.f32 %v3783_v60, %v3770_v16 }
 0x19f   :  { %v3797_v62 = vpop.f32.mrf.mxu1 }
 0x1a0   :  { %4056 = vmatpush.bf16.msra.mxu0 %v6165_v33  ;;  %v3772_v29 = vadd.f32 %v3771_v61, %v3758_v25  ;;  %v6170_v61 = vld [vmem:[#allocation8 + $0x10] sm:$0xff] }
 0x1a1   :  { %4140 = vmatpush.bf16.msra.mxu1 %v6174_v39 }
 0x1a2   :  { %v3786_v31 = vadd.f32 %v3785_v2, %v3772_v29 }
 0x1a3   :  { %v3813_v8 = vpop.f32.mrf.mxu2 }
 0x1a4   :  { %4057 = vmatpush.bf16.msra.mxu0 %v6164_v34  ;;  %v3798_v34 = vadd.f32 %v3797_v62, %v3784_v30 }
 0x1a5   :  { %v3827_v13 = vpop.f32.mrf.mxu3  ;;  %4141 = vmatpush.bf16.msra.mxu1 %v6173_v43 }
 0x1a7   :  { %v3799_v6 = vpop.f32.mrf.mxu1 }
 0x1a8   :  { %4058 = vmatpush.bf16.msra.mxu0 %v6163_v35 }
 0x1a9   :  { %4142 = vmatpush.bf16.msra.mxu1 %v6172_v48 }
 0x1ac   :  { %4059 = vmatpush.bf16.msra.mxu0 %v6162_v36  ;;  %v3812_v36 = vadd.f32 %v3811_v0, %v3798_v34 }
 0x1ad   :  { %4143 = vmatpush.bf16.msra.mxu1 %v6171_v56 }
 0x1ae   :  { %v3826_v44 = vadd.f32 %v3825_v3, %v3812_v36  ;;  %v6169_v3 = vld [vmem:[#allocation8 + $0x8] sm:$0xff] }
 0x1b0   :  { %4060 = vmatpush.bf16.msra.mxu0 %v6161_v37  ;;  %v3800_v37 = vadd.f32 %v3799_v6, %v3786_v31 }
 0x1b1   :  { %4144 = vmatpush.bf16.msra.mxu1 %v6170_v61 }
 0x1b2   :  { %v3814_v40 = vadd.f32 %v3813_v8, %v3800_v37  ;;  %v6168_v8 = vld [vmem:[#allocation8] sm:$0xff] }
 0x1b4   :  { %4061 = vmatpush.bf16.msra.mxu0 %v6160_v38  ;;  %v3839_v9 = vpop.f32.mrf.mxu0  ;;  %v3828_v46 = vadd.f32 %v3827_v13, %v3814_v40 }
 0x1b5   :  { %v3840_v47 = vadd.f32 %v3839_v9, %v3826_v44  ;;  %4145 = vmatpush.bf16.msra.mxu1 %v6169_v3 }
 0x1b6   :  { %v3853_v15 = vpop.f32.mrf.mxu1 }
 0x1b7   :  { %4062 = vmatmul.bf16.vlgmr.msra.gmra.mxu0 %v241_v42  ;;  %v3854_v51 = vadd.f32 %v3853_v15, %v3840_v47 }
 0x1b9   :  { %4146 = vmatpush.bf16.msra.mxu1 %v6168_v8 }
 0x1bb   :  { %v3867_v41 = vpop.f32.mrf.mxu2 }
 0x1bc   :  { %v3841_v20 = vpop.f32.mrf.mxu0  ;;  %v3868_v54 = vadd.f32 %v3867_v41, %v3854_v51 }
 0x1bd   :  { %v3881_v22 = vpop.f32.mrf.mxu3  ;;  %v3842_v49 = vadd.f32 %v3841_v20, %v3828_v46  ;;  %v6189_v46 = vld [vmem:[#allocation10] ss:$0 sm:$0xff] }
 0x1be   :  { %v3855_v26 = vpop.f32.mrf.mxu1  ;;  %v3882_v59 = vadd.f32 %v3881_v22, %v3868_v54 }
 0x1bf   :  { %v3856_v55 = vadd.f32 %v3855_v26, %v3842_v49 }
 0x1c3   :  { %v3869_v27 = vpop.f32.mrf.mxu2 }
 0x1c4   :  { %v3870_v57 = vadd.f32 %v3869_v27, %v3856_v55 }
 0x1c5   :  { %v3883_v33 = vpop.f32.mrf.mxu3 }
 0x1c6   :  { %v3884_v62 = vadd.f32 %v3883_v33, %v3870_v57 }
 0x1d4   :  { %v3895_v28 = vpop.f32.mrf.mxu0 }
 0x1d5   :  { %v3896_v63 = vadd.f32 %v3895_v28, %v3882_v59 }
 0x1d6   :  { %v3909_v35 = vpop.f32.mrf.mxu1 }
 0x1d7   :  { %v3910_v4 = vadd.f32 %v3909_v35, %v3896_v63 }
 0x1db   :  { %v3923_v38 = vpop.f32.mrf.mxu2 }
 0x1dc   :  { %v3897_v42 = vpop.f32.mrf.mxu0  ;;  %v3924_v6 = vadd.f32 %v3923_v38, %v3910_v4 }
 0x1dd   :  { %v3937_v45 = vpop.f32.mrf.mxu3  ;;  %v3898_v1 = vadd.f32 %v3897_v42, %v3884_v62 }
 0x1de   :  { %v3911_v50 = vpop.f32.mrf.mxu1  ;;  %v3938_v11 = vadd.f32 %v3937_v45, %v3924_v6 }
 0x1df   :  { %v3912_v7 = vadd.f32 %v3911_v50, %v3898_v1 }
 0x1e3   :  { %v3925_v52 = vpop.f32.mrf.mxu2 }
 0x1e4   :  { %v3926_v9 = vadd.f32 %v3925_v52, %v3912_v7 }
 0x1e5   :  { %v3939_v58 = vpop.f32.mrf.mxu3 }
 0x1e6   :  { %v3940_v14 = vadd.f32 %v3939_v58, %v3926_v9 }
 0x1f4   :  { %v3951_v53 = vpop.f32.mrf.mxu0 }
 0x1f5   :  { %v3952_v15 = vadd.f32 %v3951_v53, %v3938_v11 }
 0x1f6   :  { %v3965_v60 = vpop.f32.mrf.mxu1 }
 0x1f7   :  { %v3966_v41 = vadd.f32 %v3965_v60, %v3952_v15 }
 0x1fb   :  { %v3979_v0 = vpop.f32.mrf.mxu2 }
 0x1fc   :  { %v3953_v2 = vpop.f32.mrf.mxu0  ;;  %v3980_v20 = vadd.f32 %v3979_v0, %v3966_v41 }
 0x1fd   :  { %v3993_v5 = vpop.f32.mrf.mxu3  ;;  %v3954_v17 = vadd.f32 %v3953_v2, %v3940_v14 }
 0x1fe   :  { %v3967_v10 = vpop.f32.mrf.mxu1  ;;  %v3994_v25 = vadd.f32 %v3993_v5, %v3980_v20 }
 0x1ff   :  { %v3968_v21 = vadd.f32 %v3967_v10, %v3954_v17 }
 0x203   :  { %v3981_v12 = vpop.f32.mrf.mxu2 }
 0x204   :  { %v3982_v23 = vadd.f32 %v3981_v12, %v3968_v21 }
 0x205   :  { %v3995_v18 = vpop.f32.mrf.mxu3 }
 0x206   :  { %v3996_v16 = vadd.f32 %v3995_v18, %v3982_v23 }
 0x214   :  { %v4007_v13 = vpop.f32.mrf.mxu0 }
 0x215   :  { %v4008_v27 = vadd.f32 %v4007_v13, %v3994_v25 }
 0x216   :  { %v4021_v19 = vpop.f32.mrf.mxu1 }
 0x217   :  { %v4022_v30 = vadd.f32 %v4021_v19, %v4008_v27 }
 0x21b   :  { %v4035_v22 = vpop.f32.mrf.mxu2 }
 0x21c   :  { %v4009_v24 = vpop.f32.mrf.mxu0  ;;  %v4036_v33 = vadd.f32 %v4035_v22, %v4022_v30 }
 0x21d   :  { %v4049_v26 = vpop.f32.mrf.mxu3  ;;  %v4010_v28 = vadd.f32 %v4009_v24, %v3996_v16 }
 0x21e   :  { %v4023_v29 = vpop.f32.mrf.mxu1  ;;  %v4050_v37 = vadd.f32 %v4049_v26, %v4036_v33 }
 0x21f   :  { %v4024_v34 = vadd.f32 %v4023_v29, %v4010_v28 }
 0x223   :  { %v4037_v31 = vpop.f32.mrf.mxu2 }
 0x224   :  { %v4038_v35 = vadd.f32 %v4037_v31, %v4024_v34 }
 0x225   :  { %v4051_v36 = vpop.f32.mrf.mxu3 }
 0x226   :  { %v4052_v38 = vadd.f32 %v4051_v36, %v4038_v35 }
 0x234   :  { %v4063_v32 = vpop.f32.mrf.mxu0 }
 0x235   :  { %v4064_v39 = vadd.f32 %v4063_v32, %v4050_v37 }
 0x237   :  { %v4068_v43 = vmax.f32 %v4064_v39, 0.0 }
 0x23c   :  { %v4065_v40 = vpop.f32.mrf.mxu0 }
 0x23d   :  { %v4066_v42 = vadd.f32 %v4065_v40, %v4052_v38 }
 0x23f   :  { %v4069_v44 = vmax.f32 %v4066_v42, 0.0 }
 0x241   :  { %v4070_v45 = vpack.c.bf16 %v4069_v44, %v4068_v43 }
 0x243   :  { %4147 = vmatmul.bf16.vlgmr.msra.gmra.mxu1 %v4070_v45 }
 0x2c0   :  { %v4148_v47 = vpop.f32.mrf.mxu1 }
 0x2c1   :  { %v4149_v48 = vadd.f32 %v6189_v46, %v4148_v47 }
 0x2c3   :  { %4153 = vst [vmem:[#allocation11] sm:$0xff] %v4149_v48 }
 0x2c8   :  { %v4150_v49 = vpop.f32.mrf.mxu1 }
 0x2c9   :  { %v4151_v50 = vadd.f32 %v6189_v46, %v4150_v49 }
 0x2cb   :  { %4154 = vst [vmem:[#allocation11 + $0x8] sm:$0xff] %v4151_v50 }
 0x2cc   :  { %4167 = dma.vmem_to_hbm [thread:$0]  %s4160_s4, 256, %s4162_s21, [#allocation4], %s6352_s22, %s6352_s22, %s6353_s23  }
 0x2cd   :  { %6340 = dma.done.wait [#allocation4], 256  }
 0x2ce   :  { %6341 = vsyncadd [#allocation4], 4294967040 }
 0x2cf   :  { %4172 = vsyncpa [#allocation3], 1 }
 0x2d0   :  { %4173 = vsyncpa [#allocation6], 1 }
 0x2d1   :  { %4174 = vsyncpa [#allocation9], 1 }
 0x2d2   :  { %4175 = vsyncpa [#allocation4], 1 }

</bundles_post_ra>
